<compile_context>
chip_gen: v7x
topology: tpu7x:2x2x1
jax: 0.10.0
libtpu: 0.0.40
codegen_flags: <defaults>
</compile_context>

<pallas_src>
import jax
import jax.numpy as jnp
import numpy as np
from jax.experimental import pallas as pl
from jax.experimental.pallas import tpu as pltpu


# ----------------------------------------------------------------------------
# Pallas kernels
# ----------------------------------------------------------------------------
def _conv_mm_kernel(w_ref, p_ref, b_ref, o_ref):
    # out(O, M) = relu(W(O, K) @ patches(K, M) + b(O, 1))
    acc = jnp.dot(w_ref[...], p_ref[...], preferred_element_type=jnp.float32)
    acc = jnp.maximum(acc + b_ref[...], 0.0)
    o_ref[...] = acc.astype(o_ref.dtype)


def _fused_mlp_kernel(x_ref, wl_ref, bl_ref, wq_ref, bq_ref, o_ref):
    # h = relu(x @ wl + bl); q = h @ wq + bq   -- h never leaves VMEM/registers.
    h = jnp.dot(x_ref[...], wl_ref[...], preferred_element_type=jnp.float32)
    h = jnp.maximum(h + bl_ref[...], 0.0)
    q = jnp.dot(h.astype(wq_ref.dtype), wq_ref[...],
                preferred_element_type=jnp.float32)
    o_ref[...] = (q + bq_ref[...]).astype(o_ref.dtype)


# ----------------------------------------------------------------------------
# Pallas wrappers
# ----------------------------------------------------------------------------
def conv_matmul_bias_relu(w, patches, b, *, tm=4096):
    """w: (O, K) bf16, patches: (K, M) bf16, b: (O, 1) f32 -> (O, M) bf16."""
    O, K = w.shape
    K2, M = patches.shape
    assert K == K2
    # Single exact block when M is small; otherwise 128-aligned lane blocks.
    tm_eff = M if M <= tm else tm
    grid = (pl.cdiv(M, tm_eff),)
    cost = pl.CostEstimate(
        flops=2 * O * K * M,
        transcendentals=0,
        bytes_accessed=(w.size * w.dtype.itemsize
                        + patches.size * patches.dtype.itemsize
                        + b.size * 4 + O * M * 2),
    )
    return pl.pallas_call(
        _conv_mm_kernel,
        out_shape=jax.ShapeDtypeStruct((O, M), jnp.bfloat16),
        grid=grid,
        in_specs=[
            pl.BlockSpec((O, K), lambda i: (0, 0)),        # weights resident
            pl.BlockSpec((K, tm_eff), lambda i: (0, i)),   # patch lane-block
            pl.BlockSpec((O, 1), lambda i: (0, 0)),        # bias column
        ],
        out_specs=pl.BlockSpec((O, tm_eff), lambda i: (0, i)),
        compiler_params=pltpu.CompilerParams(dimension_semantics=("parallel",)),
        cost_estimate=cost,
    )(w, patches, b)


def fused_mlp(flat, wl, bl, wq, bq, *, tb=256):
    """flat: (B, 3136) bf16, wl: (3136, 256) bf16, wq: (256, A) bf16 -> (B, A) f32."""
    B, K = flat.shape
    K2, H = wl.shape
    H2, A = wq.shape
    assert K == K2 and H == H2
    tb_eff = B if B <= tb else tb
    grid = (pl.cdiv(B, tb_eff),)
    cost = pl.CostEstimate(
        flops=2 * B * K * H + 2 * B * H * A,
        transcendentals=0,
        bytes_accessed=(flat.size * 2 + wl.size * 2 + wq.size * 2
                        + (bl.size + bq.size) * 4 + B * A * 4),
    )
    return pl.pallas_call(
        _fused_mlp_kernel,
        out_shape=jax.ShapeDtypeStruct((B, A), jnp.float32),
        grid=grid,
        in_specs=[
            pl.BlockSpec((tb_eff, K), lambda i: (i, 0)),
            pl.BlockSpec((K, H), lambda i: (0, 0)),
            pl.BlockSpec((1, H), lambda i: (0, 0)),
            pl.BlockSpec((H, A), lambda i: (0, 0)),
            pl.BlockSpec((1, A), lambda i: (0, 0)),
        ],
        out_specs=pl.BlockSpec((tb_eff, A), lambda i: (i, 0)),
        compiler_params=pltpu.CompilerParams(dimension_semantics=("parallel",)),
        cost_estimate=cost,
    )(flat, wl, bl, wq, bq)


# ----------------------------------------------------------------------------
# im2col glue (channel-first: pure strided slices + one stack, no layout shuffles)
# ----------------------------------------------------------------------------
def im2col_cf(x, k, s):
    """x: (C, B, H, W) -> patches (C*k*k, B*OH*OW), feature order (C, KH, KW)."""
    C, B, H, W = x.shape
    OH = (H - k) // s + 1
    OW = (W - k) // s + 1
    # TODO(synk): fuse this strided patch gather into the Pallas kernel (needs
    # strided in-VMEM slicing); kept as XLA strided slices + one stack for now.
    cols = []
    for i in range(k):
        for j in range(k):
            cols.append(x[:, :, i:i + s * (OH - 1) + 1:s, j:j + s * (OW - 1) + 1:s])
    p = jnp.stack(cols, axis=1)                       # (C, k*k, B, OH, OW)
    return p.reshape(C * k * k, B * OH * OW), OH, OW


def conv2d_relu(x, w_mat, b_col, *, k=3, stride=2):
    """x: (C, B, H, W) bf16, w_mat: (O, C*k*k) bf16, b_col: (O, 1) f32
    -> (O, B, OH, OW) bf16 (channel-first, reshapes for free into next im2col)."""
    C, B, H, W = x.shape
    O = w_mat.shape[0]
    patches, OH, OW = im2col_cf(x, k, stride)
    y = conv_matmul_bias_relu(w_mat, patches, b_col)  # (O, B*OH*OW)
    return y.reshape(O, B, OH, OW)


# ----------------------------------------------------------------------------
# Parameters (PyTorch-style init) + one-time preparation (reshape/transpose/cast)
# ----------------------------------------------------------------------------
def init_params(key, n_actions):
    def uniform(key, shape, fan_in):
        bound = 1.0 / np.sqrt(fan_in)
        return jax.random.uniform(key, shape, jnp.float32, -bound, bound)

    keys = jax.random.split(key, 10)
    p = {}
    p["w1"] = uniform(keys[0], (16, 4, 3, 3), 4 * 9)
    p["b1"] = uniform(keys[1], (16,), 4 * 9)
    p["w2"] = uniform(keys[2], (32, 16, 3, 3), 16 * 9)
    p["b2"] = uniform(keys[3], (32,), 16 * 9)
    p["w3"] = uniform(keys[4], (64, 32, 3, 3), 32 * 9)
    p["b3"] = uniform(keys[5], (64,), 32 * 9)
    p["wl"] = uniform(keys[6], (256, 3136), 3136)
    p["bl"] = uniform(keys[7], (256,), 3136)
    p["wq"] = uniform(keys[8], (n_actions, 256), 256)
    p["bq"] = uniform(keys[9], (n_actions,), 256)
    return p


def prepare_params(p):
    """One-time weight reshape/transpose/cast so the jitted forward does none."""
    prep = {}
    for i in (1, 2, 3):
        w = p[f"w{i}"]
        O = w.shape[0]
        prep[f"w{i}"] = w.reshape(O, -1).astype(jnp.bfloat16)      # (O, C*k*k)
        prep[f"b{i}"] = p[f"b{i}"].reshape(O, 1).astype(jnp.float32)
    prep["wl"] = p["wl"].T.astype(jnp.bfloat16)                    # (3136, 256)
    prep["bl"] = p["bl"].reshape(1, -1).astype(jnp.float32)
    prep["wq"] = p["wq"].T.astype(jnp.bfloat16)                    # (256, A)
    prep["bq"] = p["bq"].reshape(1, -1).astype(jnp.float32)
    return prep


# ----------------------------------------------------------------------------
# Forward pass (matches PyTorch Model.forward)
# ----------------------------------------------------------------------------
@jax.jit
def forward(prep, x):
    """x: (B, 4, 64, 64) float32 NCHW -> (B, n_actions) float32."""
    B = x.shape[0]
    x = x.astype(jnp.bfloat16).transpose(1, 0, 2, 3)          # (4, B, 64, 64)
    x = conv2d_relu(x, prep["w1"], prep["b1"])                # (16, B, 31, 31)
    x = conv2d_relu(x, prep["w2"], prep["b2"])                # (32, B, 15, 15)
    x = conv2d_relu(x, prep["w3"], prep["b3"])                # (64, B, 7, 7)
    # Flatten in PyTorch (C, H, W) order for the Linear layer (tiny transpose).
    flat = x.transpose(1, 0, 2, 3).reshape(B, 64 * 7 * 7)     # (B, 3136)
    return fused_mlp(flat, prep["wl"], prep["bl"], prep["wq"], prep["bq"])


# ----------------------------------------------------------------------------
# References for verification
# ----------------------------------------------------------------------------
def forward_ref_f32(p, x):
    """Pure f32 XLA reference (exact PyTorch semantics)."""
    def conv(x, w, b):
        y = jax.lax.conv_general_dilated(
            x, w, window_strides=(2, 2), padding="VALID",
            dimension_numbers=("NCHW", "OIHW", "NCHW"))
        return jax.nn.relu(y + b[None, :, None, None])

    B = x.shape[0]
    x = conv(x, p["w1"], p["b1"])
    x = conv(x, p["w2"], p["b2"])
    x = conv(x, p["w3"], p["b3"])
    flat = x.reshape(B, -1)
    h = jax.nn.relu(flat @ p["wl"].T + p["bl"])
    return h @ p["wq"].T + p["bq"]


def forward_ref_bf16(p, x):
    """XLA reference with the same bf16-operand / f32-accumulate quantization."""
    def conv(x, w, b):
        y = jax.lax.conv_general_dilated(
            x.astype(jnp.bfloat16), w.astype(jnp.bfloat16),
            window_strides=(2, 2), padding="VALID",
            dimension_numbers=("NCHW", "OIHW", "NCHW"),
            preferred_element_type=jnp.float32)
        y = jnp.maximum(y + b[None, :, None, None], 0.0)
        return y.astype(jnp.bfloat16)

    B = x.shape[0]
    x = conv(x, p["w1"], p["b1"])
    x = conv(x, p["w2"], p["b2"])
    x = conv(x, p["w3"], p["b3"])
    flat = x.reshape(B, -1)
    h = jnp.dot(flat, p["wl"].T.astype(jnp.bfloat16), preferred_element_type=jnp.float32)
    h = jnp.maximum(h + p["bl"], 0.0).astype(jnp.bfloat16)
    q = jnp.dot(h, p["wq"].T.astype(jnp.bfloat16), preferred_element_type=jnp.float32)
    return q + p["bq"]


if __name__ == "__main__":
    # Breakout: 4 actions, observation (4, 64, 64) frames (3136 = 64 * 7 * 7).
    n_actions = 4
    batch = 2
    key = jax.random.PRNGKey(0)
    k_params, k_x = jax.random.split(key)

    params = init_params(k_params, n_actions)
    prep = prepare_params(params)
    x = jax.random.uniform(k_x, (batch, 4, 64, 64), jnp.float32)

    q = forward(prep, x)
    jax.block_until_ready(q)
    assert q.shape == (batch, n_actions), q.shape

    # Tight check vs. an identically-quantized (bf16 operands, f32 accum) reference.
    q_bf16 = forward_ref_bf16(params, x)
    np.testing.assert_allclose(np.asarray(q), np.asarray(q_bf16), rtol=1e-2, atol=1e-2)

    # Loose sanity check vs. the pure-f32 PyTorch-equivalent reference.
    q_f32 = forward_ref_f32(params, x)
    np.testing.assert_allclose(np.asarray(q), np.asarray(q_f32), rtol=1e-1, atol=1e-1)

    print("KERNEL_OK")
</pallas_src>

<mosaic_0001>
module attributes {stable_mosaic.version = 11 : i64} {
  func.func @_conv_mm_kernel(%arg0: i32, %arg1: memref<16x36xbf16, #tpu.memory_space<vmem>>, %arg2: memref<36x1922xbf16, #tpu.memory_space<vmem>>, %arg3: memref<16x1xf32, #tpu.memory_space<vmem>>, %arg4: memref<16x1922xbf16, #tpu.memory_space<vmem>>) attributes {dimension_semantics = [#tpu.dimension_semantics<parallel>], iteration_bounds = array<i64: 1>, scalar_prefetch = 0 : i64, scratch_operands = 0 : i64, tpu.core_type = #tpu.core_type<tc>, window_params = [{pipeline_mode = #tpu.pipeline_mode<synchronous>, transform_indices = @transform_0, window_bounds = array<i64: 16, 36>}, {transform_indices = @transform_1, window_bounds = array<i64: 36, 1922>}, {pipeline_mode = #tpu.pipeline_mode<synchronous>, transform_indices = @transform_2, window_bounds = array<i64: 16, 1>}, {transform_indices = @transform_3, window_bounds = array<i64: 16, 1922>}]} {
    %c0 = arith.constant 0 : index
    %c0_0 = arith.constant 0 : index
    %0 = vector.load %arg1[%c0, %c0_0] : memref<16x36xbf16, #tpu.memory_space<vmem>>, vector<16x36xbf16>
    %c0_1 = arith.constant 0 : index
    %c0_2 = arith.constant 0 : index
    %1 = vector.load %arg2[%c0_1, %c0_2] : memref<36x1922xbf16, #tpu.memory_space<vmem>>, vector<36x1922xbf16>
    %cst = arith.constant dense<0.000000e+00> : vector<16x1922xf32>
    %2 = tpu.matmul %0, %1, %cst {dimension_numbers = #tpu.dot_dimension_numbers<[1], [0], [0], [1], [0, 0, 1, 1], [], []>} : vector<16x36xbf16>, vector<36x1922xbf16>, vector<16x1922xf32> -> vector<16x1922xf32>
    %c0_3 = arith.constant 0 : index
    %c0_4 = arith.constant 0 : index
    %3 = vector.load %arg3[%c0_3, %c0_4] : memref<16x1xf32, #tpu.memory_space<vmem>>, vector<16x1xf32>
    %4 = vector.broadcast %3 : vector<16x1xf32> to vector<16x1922xf32>
    %5 = arith.addf %2, %4 : vector<16x1922xf32>
    %cst_5 = arith.constant 0.000000e+00 : f32
    %6 = vector.broadcast %cst_5 : f32 to vector<16x1922xf32>
    %7 = arith.maximumf %5, %6 : vector<16x1922xf32>
    %8 = arith.truncf %7 : vector<16x1922xf32> to vector<16x1922xbf16>
    %c0_6 = arith.constant 0 : index
    %c0_7 = arith.constant 0 : index
    %9 = vector.load %arg4[%c0_6, %c0_7] : memref<16x1922xbf16, #tpu.memory_space<vmem>>, vector<16x1922xbf16>
    tpu.vector_store %arg4[%c0_6, %c0_7], %8 {strides = array<i32>} : memref<16x1922xbf16, #tpu.memory_space<vmem>>, vector<16x1922xbf16>,
    return
  }
  func.func @transform_0(%arg0: i32) -> (i32, i32) {
    %c0_i32 = arith.constant 0 : i32
    %c0_i32_0 = arith.constant 0 : i32
    %c0_i32_1 = arith.constant 0 : i32
    return %c0_i32, %c0_i32_0 : i32, i32
  }
  func.func @transform_1(%arg0: i32) -> (i32, i32) {
    %c0_i32 = arith.constant 0 : i32
    %c0_i32_0 = arith.constant 0 : i32
    return %c0_i32, %arg0 : i32, i32
  }
  func.func @transform_2(%arg0: i32) -> (i32, i32) {
    %c0_i32 = arith.constant 0 : i32
    %c0_i32_0 = arith.constant 0 : i32
    %c0_i32_1 = arith.constant 0 : i32
    return %c0_i32, %c0_i32_0 : i32, i32
  }
  func.func @transform_3(%arg0: i32) -> (i32, i32) {
    %c0_i32 = arith.constant 0 : i32
    %c0_i32_0 = arith.constant 0 : i32
    return %c0_i32, %arg0 : i32, i32
  }
}

module attributes {stable_mosaic.version = 11 : i64} {
  func.func @_conv_mm_kernel(%arg0: i32, %arg1: memref<32x144xbf16, #tpu.memory_space<vmem>>, %arg2: memref<144x450xbf16, #tpu.memory_space<vmem>>, %arg3: memref<32x1xf32, #tpu.memory_space<vmem>>, %arg4: memref<32x450xbf16, #tpu.memory_space<vmem>>) attributes {dimension_semantics = [#tpu.dimension_semantics<parallel>], iteration_bounds = array<i64: 1>, scalar_prefetch = 0 : i64, scratch_operands = 0 : i64, tpu.core_type = #tpu.core_type<tc>, window_params = [{pipeline_mode = #tpu.pipeline_mode<synchronous>, transform_indices = @transform_0, window_bounds = array<i64: 32, 144>}, {transform_indices = @transform_1, window_bounds = array<i64: 144, 450>}, {pipeline_mode = #tpu.pipeline_mode<synchronous>, transform_indices = @transform_2, window_bounds = array<i64: 32, 1>}, {transform_indices = @transform_3, window_bounds = array<i64: 32, 450>}]} {
    %c0 = arith.constant 0 : index
    %c0_0 = arith.constant 0 : index
    %0 = vector.load %arg1[%c0, %c0_0] : memref<32x144xbf16, #tpu.memory_space<vmem>>, vector<32x144xbf16>
    %c0_1 = arith.constant 0 : index
    %c0_2 = arith.constant 0 : index
    %1 = vector.load %arg2[%c0_1, %c0_2] : memref<144x450xbf16, #tpu.memory_space<vmem>>, vector<144x450xbf16>
    %cst = arith.constant dense<0.000000e+00> : vector<32x450xf32>
    %2 = tpu.matmul %0, %1, %cst {dimension_numbers = #tpu.dot_dimension_numbers<[1], [0], [0], [1], [0, 0, 1, 1], [], []>} : vector<32x144xbf16>, vector<144x450xbf16>, vector<32x450xf32> -> vector<32x450xf32>
    %c0_3 = arith.constant 0 : index
    %c0_4 = arith.constant 0 : index
    %3 = vector.load %arg3[%c0_3, %c0_4] : memref<32x1xf32, #tpu.memory_space<vmem>>, vector<32x1xf32>
    %4 = vector.broadcast %3 : vector<32x1xf32> to vector<32x450xf32>
    %5 = arith.addf %2, %4 : vector<32x450xf32>
    %cst_5 = arith.constant 0.000000e+00 : f32
    %6 = vector.broadcast %cst_5 : f32 to vector<32x450xf32>
    %7 = arith.maximumf %5, %6 : vector<32x450xf32>
    %8 = arith.truncf %7 : vector<32x450xf32> to vector<32x450xbf16>
    %c0_6 = arith.constant 0 : index
    %c0_7 = arith.constant 0 : index
    %9 = vector.load %arg4[%c0_6, %c0_7] : memref<32x450xbf16, #tpu.memory_space<vmem>>, vector<32x450xbf16>
    tpu.vector_store %arg4[%c0_6, %c0_7], %8 {strides = array<i32>} : memref<32x450xbf16, #tpu.memory_space<vmem>>, vector<32x450xbf16>,
    return
  }
  func.func @transform_0(%arg0: i32) -> (i32, i32) {
    %c0_i32 = arith.constant 0 : i32
    %c0_i32_0 = arith.constant 0 : i32
    %c0_i32_1 = arith.constant 0 : i32
    return %c0_i32, %c0_i32_0 : i32, i32
  }
  func.func @transform_1(%arg0: i32) -> (i32, i32) {
    %c0_i32 = arith.constant 0 : i32
    %c0_i32_0 = arith.constant 0 : i32
    return %c0_i32, %arg0 : i32, i32
  }
  func.func @transform_2(%arg0: i32) -> (i32, i32) {
    %c0_i32 = arith.constant 0 : i32
    %c0_i32_0 = arith.constant 0 : i32
    %c0_i32_1 = arith.constant 0 : i32
    return %c0_i32, %c0_i32_0 : i32, i32
  }
  func.func @transform_3(%arg0: i32) -> (i32, i32) {
    %c0_i32 = arith.constant 0 : i32
    %c0_i32_0 = arith.constant 0 : i32
    return %c0_i32, %arg0 : i32, i32
  }
}

module attributes {stable_mosaic.version = 11 : i64} {
  func.func @_conv_mm_kernel(%arg0: i32, %arg1: memref<64x288xbf16, #tpu.memory_space<vmem>>, %arg2: memref<288x98xbf16, #tpu.memory_space<vmem>>, %arg3: memref<64x1xf32, #tpu.memory_space<vmem>>, %arg4: memref<64x98xbf16, #tpu.memory_space<vmem>>) attributes {dimension_semantics = [#tpu.dimension_semantics<parallel>], iteration_bounds = array<i64: 1>, scalar_prefetch = 0 : i64, scratch_operands = 0 : i64, tpu.core_type = #tpu.core_type<tc>, window_params = [{pipeline_mode = #tpu.pipeline_mode<synchronous>, transform_indices = @transform_0, window_bounds = array<i64: 64, 288>}, {transform_indices = @transform_1, window_bounds = array<i64: 288, 98>}, {pipeline_mode = #tpu.pipeline_mode<synchronous>, transform_indices = @transform_2, window_bounds = array<i64: 64, 1>}, {transform_indices = @transform_3, window_bounds = array<i64: 64, 98>}]} {
    %c0 = arith.constant 0 : index
    %c0_0 = arith.constant 0 : index
    %0 = vector.load %arg1[%c0, %c0_0] : memref<64x288xbf16, #tpu.memory_space<vmem>>, vector<64x288xbf16>
    %c0_1 = arith.constant 0 : index
    %c0_2 = arith.constant 0 : index
    %1 = vector.load %arg2[%c0_1, %c0_2] : memref<288x98xbf16, #tpu.memory_space<vmem>>, vector<288x98xbf16>
    %cst = arith.constant dense<0.000000e+00> : vector<64x98xf32>
    %2 = tpu.matmul %0, %1, %cst {dimension_numbers = #tpu.dot_dimension_numbers<[1], [0], [0], [1], [0, 0, 1, 1], [], []>} : vector<64x288xbf16>, vector<288x98xbf16>, vector<64x98xf32> -> vector<64x98xf32>
    %c0_3 = arith.constant 0 : index
    %c0_4 = arith.constant 0 : index
    %3 = vector.load %arg3[%c0_3, %c0_4] : memref<64x1xf32, #tpu.memory_space<vmem>>, vector<64x1xf32>
    %4 = vector.broadcast %3 : vector<64x1xf32> to vector<64x98xf32>
    %5 = arith.addf %2, %4 : vector<64x98xf32>
    %cst_5 = arith.constant 0.000000e+00 : f32
    %6 = vector.broadcast %cst_5 : f32 to vector<64x98xf32>
    %7 = arith.maximumf %5, %6 : vector<64x98xf32>
    %8 = arith.truncf %7 : vector<64x98xf32> to vector<64x98xbf16>
    %c0_6 = arith.constant 0 : index
    %c0_7 = arith.constant 0 : index
    %9 = vector.load %arg4[%c0_6, %c0_7] : memref<64x98xbf16, #tpu.memory_space<vmem>>, vector<64x98xbf16>
    tpu.vector_store %arg4[%c0_6, %c0_7], %8 {strides = array<i32>} : memref<64x98xbf16, #tpu.memory_space<vmem>>, vector<64x98xbf16>,
    return
  }
  func.func @transform_0(%arg0: i32) -> (i32, i32) {
    %c0_i32 = arith.constant 0 : i32
    %c0_i32_0 = arith.constant 0 : i32
    %c0_i32_1 = arith.constant 0 : i32
    return %c0_i32, %c0_i32_0 : i32, i32
  }
  func.func @transform_1(%arg0: i32) -> (i32, i32) {
    %c0_i32 = arith.constant 0 : i32
    %c0_i32_0 = arith.constant 0 : i32
    return %c0_i32, %arg0 : i32, i32
  }
  func.func @transform_2(%arg0: i32) -> (i32, i32) {
    %c0_i32 = arith.constant 0 : i32
    %c0_i32_0 = arith.constant 0 : i32
    %c0_i32_1 = arith.constant 0 : i32
    return %c0_i32, %c0_i32_0 : i32, i32
  }
  func.func @transform_3(%arg0: i32) -> (i32, i32) {
    %c0_i32 = arith.constant 0 : i32
    %c0_i32_0 = arith.constant 0 : i32
    return %c0_i32, %arg0 : i32, i32
  }
}

module attributes {stable_mosaic.version = 11 : i64} {
  func.func @_fused_mlp_kernel(%arg0: i32, %arg1: memref<2x3136xbf16, #tpu.memory_space<vmem>>, %arg2: memref<3136x256xbf16, #tpu.memory_space<vmem>>, %arg3: memref<1x256xf32, #tpu.memory_space<vmem>>, %arg4: memref<256x4xbf16, #tpu.memory_space<vmem>>, %arg5: memref<1x4xf32, #tpu.memory_space<vmem>>, %arg6: memref<2x4xf32, #tpu.memory_space<vmem>>) attributes {dimension_semantics = [#tpu.dimension_semantics<parallel>], iteration_bounds = array<i64: 1>, scalar_prefetch = 0 : i64, scratch_operands = 0 : i64, tpu.core_type = #tpu.core_type<tc>, window_params = [{transform_indices = @transform_0, window_bounds = array<i64: 2, 3136>}, {pipeline_mode = #tpu.pipeline_mode<synchronous>, transform_indices = @transform_1, window_bounds = array<i64: 3136, 256>}, {pipeline_mode = #tpu.pipeline_mode<synchronous>, transform_indices = @transform_2, window_bounds = array<i64: 1, 256>}, {pipeline_mode = #tpu.pipeline_mode<synchronous>, transform_indices = @transform_3, window_bounds = array<i64: 256, 4>}, {pipeline_mode = #tpu.pipeline_mode<synchronous>, transform_indices = @transform_4, window_bounds = array<i64: 1, 4>}, {transform_indices = @transform_5, window_bounds = array<i64: 2, 4>}]} {
    %c0 = arith.constant 0 : index
    %c0_0 = arith.constant 0 : index
    %0 = vector.load %arg1[%c0, %c0_0] : memref<2x3136xbf16, #tpu.memory_space<vmem>>, vector<2x3136xbf16>
    %c0_1 = arith.constant 0 : index
    %c0_2 = arith.constant 0 : index
    %1 = vector.load %arg2[%c0_1, %c0_2] : memref<3136x256xbf16, #tpu.memory_space<vmem>>, vector<3136x256xbf16>
    %cst = arith.constant dense<0.000000e+00> : vector<2x256xf32>
    %2 = tpu.matmul %0, %1, %cst {dimension_numbers = #tpu.dot_dimension_numbers<[1], [0], [0], [1], [0, 0, 1, 1], [], []>} : vector<2x3136xbf16>, vector<3136x256xbf16>, vector<2x256xf32> -> vector<2x256xf32>
    %c0_3 = arith.constant 0 : index
    %c0_4 = arith.constant 0 : index
    %3 = vector.load %arg3[%c0_3, %c0_4] : memref<1x256xf32, #tpu.memory_space<vmem>>, vector<1x256xf32>
    %4 = vector.broadcast %3 : vector<1x256xf32> to vector<2x256xf32>
    %5 = arith.addf %2, %4 : vector<2x256xf32>
    %cst_5 = arith.constant 0.000000e+00 : f32
    %6 = vector.broadcast %cst_5 : f32 to vector<2x256xf32>
    %7 = arith.maximumf %5, %6 : vector<2x256xf32>
    %8 = arith.truncf %7 : vector<2x256xf32> to vector<2x256xbf16>
    %c0_6 = arith.constant 0 : index
    %c0_7 = arith.constant 0 : index
    %9 = vector.load %arg4[%c0_6, %c0_7] : memref<256x4xbf16, #tpu.memory_space<vmem>>, vector<256x4xbf16>
    %cst_8 = arith.constant dense<0.000000e+00> : vector<2x4xf32>
    %10 = tpu.matmul %8, %9, %cst_8 {dimension_numbers = #tpu.dot_dimension_numbers<[1], [0], [0], [1], [0, 0, 1, 1], [], []>} : vector<2x256xbf16>, vector<256x4xbf16>, vector<2x4xf32> -> vector<2x4xf32>
    %c0_9 = arith.constant 0 : index
    %c0_10 = arith.constant 0 : index
    %11 = vector.load %arg5[%c0_9, %c0_10] : memref<1x4xf32, #tpu.memory_space<vmem>>, vector<1x4xf32>
    %12 = vector.broadcast %11 : vector<1x4xf32> to vector<2x4xf32>
    %13 = arith.addf %10, %12 : vector<2x4xf32>
    %c0_11 = arith.constant 0 : index
    %c0_12 = arith.constant 0 : index
    %14 = vector.load %arg6[%c0_11, %c0_12] : memref<2x4xf32, #tpu.memory_space<vmem>>, vector<2x4xf32>
    tpu.vector_store %arg6[%c0_11, %c0_12], %13 {strides = array<i32>} : memref<2x4xf32, #tpu.memory_space<vmem>>, vector<2x4xf32>,
    return
  }
  func.func @transform_0(%arg0: i32) -> (i32, i32) {
    %c0_i32 = arith.constant 0 : i32
    %c0_i32_0 = arith.constant 0 : i32
    return %arg0, %c0_i32 : i32, i32
  }
  func.func @transform_1(%arg0: i32) -> (i32, i32) {
    %c0_i32 = arith.constant 0 : i32
    %c0_i32_0 = arith.constant 0 : i32
    %c0_i32_1 = arith.constant 0 : i32
    return %c0_i32, %c0_i32_0 : i32, i32
  }
  func.func @transform_2(%arg0: i32) -> (i32, i32) {
    %c0_i32 = arith.constant 0 : i32
    %c0_i32_0 = arith.constant 0 : i32
    %c0_i32_1 = arith.constant 0 : i32
    return %c0_i32, %c0_i32_0 : i32, i32
  }
  func.func @transform_3(%arg0: i32) -> (i32, i32) {
    %c0_i32 = arith.constant 0 : i32
    %c0_i32_0 = arith.constant 0 : i32
    %c0_i32_1 = arith.constant 0 : i32
    return %c0_i32, %c0_i32_0 : i32, i32
  }
  func.func @transform_4(%arg0: i32) -> (i32, i32) {
    %c0_i32 = arith.constant 0 : i32
    %c0_i32_0 = arith.constant 0 : i32
    %c0_i32_1 = arith.constant 0 : i32
    return %c0_i32, %c0_i32_0 : i32, i32
  }
  func.func @transform_5(%arg0: i32) -> (i32, i32) {
    %c0_i32 = arith.constant 0 : i32
    %c0_i32_0 = arith.constant 0 : i32
    return %arg0, %c0_i32 : i32, i32
  }
}

</mosaic_0001>

<bundles_post_ra>
// kernel: forward.4
= control target key start
LH: loop header
LB: loop body
LE: loop exit
PB: predicated region body
PF: predicated region fallthrough
CT: control target
= control target key end

     0   :  { %v938_v3 = vmov 0   ;;  %vm278_vm0 = vcmask 1041408   ;;  %vm274_vm1 = vcmask 293888   ;;  %vm806_vm2 = vcmask 1043456   ;;  %s1216_s1 = inlined_call_operand.vmem [shape: bf16[36,1922], index: 1, kind: input, shape index: {}]   ;;  %s1217_s0 = inlined_call_operand.vmem [shape: bf16[16,36], index: 0, kind: input, shape index: {}]   ;;  %s1218_s2 = inlined_call_operand.vmem [shape: f32[16,1], index: 2, kind: input, shape index: {}]   ;;  %s1219_s3 = inlined_call_operand.vmem [shape: bf16[16,1922], index: 3, kind: output, shape index: {}]  }
   0x1   :  { %v17_v0 = vld [vmem:[%s1216_s1] sm:$0xff]  ;;  %v18_v2 = vld [vmem:[%s1216_s1 + $0x8] sm:$0xff]  ;;  %359 = vmatprep.mubr.bf16.mxu0 %v938_v3  ;;  %402 = vmatprep.mubr.bf16.mxu1 %v938_v3  ;;  %v19_v23 = vld [vmem:[%s1216_s1 + $0x10] sm:$0xff]  ;;  %vm807_vm3 = vcmask 15364  }
   0x2   :  { %v25_v1 = vld [vmem:[%s1216_s1 + $0x40] sm:$0xff]  ;;  %v26_v5 = vld [vmem:[%s1216_s1 + $0x48] sm:$0xff]  ;;  %920 = vset.pattern.permute.xlu0 %v938_v3  ;;  %v27_v24 = vld [vmem:[%s1216_s1 + $0x50] sm:$0xff] }
   0x3   :  { %v824_v4 = vcombine.high %v17_v0, %v25_v1  ;;  %v823_v6 = vcombine.low %v17_v0, %v25_v1  ;;  %v33_v7 = vld [vmem:[%s1216_s1 + $0x80] sm:$0xff]  ;;  %v826_v9 = vcombine.high %v18_v2, %v26_v5  ;;  %v825_v10 = vcombine.low %v18_v2, %v26_v5  ;;  %v34_v12 = vld [vmem:[%s1216_s1 + $0x88] sm:$0xff]  ;;  %v20_v25 = vld [vmem:[%s1216_s1 + $0x18] sm:$0xff] }
   0x4   :  { %v41_v8 = vld [vmem:[%s1216_s1 + $0xc0] sm:$0xff]  ;;  %v42_v13 = vld [vmem:[%s1216_s1 + $0xc8] sm:$0xff]  ;;  %v28_v26 = vld [vmem:[%s1216_s1 + $0x58] sm:$0xff]  ;;  %v828_v28 = vcombine.high %v19_v23, %v27_v24  ;;  %v827_v36 = vcombine.low %v19_v23, %v27_v24 }
   0x5   :  { %v840_v11 = vcombine.high %v33_v7, %v41_v8  ;;  %v49_v14 = vld [vmem:[%s1216_s1 + $0x100] sm:$0x33]  ;;  %327 = vmatprep.subr.bf16.mxu0 %v824_v4  ;;  %v842_v15 = vcombine.high %v34_v12, %v42_v13  ;;  %v50_v16 = vld [vmem:[%s1216_s1 + $0x108] sm:$0x33]  ;;  %370 = vmatprep.subr.bf16.mxu1 %v826_v9  ;;  %v839_v17 = vcombine.low %v33_v7, %v41_v8  ;;  %v35_v31 = vld [vmem:[%s1216_s1 + $0x90] sm:$0xff] }
   0x6   :  { %328 = vmatpush1.bf16.msra.mxu0 %v823_v6  ;;  %371 = vmatpush1.bf16.msra.mxu1 %v825_v10  ;;  %v841_v18 = vcombine.low %v34_v12, %v42_v13  ;;  %v856_v19 = vcombine.high %v49_v14, %v49_v14  ;;  %v855_v20 = vcombine.low %v49_v14, %v49_v14  ;;  %v43_v32 = vld [vmem:[%s1216_s1 + $0xd0] sm:$0xff]  ;;  %v1017_v33 = vld [vmem:[%s1217_s0] sm:$0xff]   ;;  %v36_v34 = vld [vmem:[%s1216_s1 + $0x98] sm:$0xff] }
   0x7   :  { %329 = vmatprep.subr.bf16.mxu0 %v840_v11  ;;  %372 = vmatprep.subr.bf16.mxu1 %v842_v15  ;;  %v858_v21 = vcombine.high %v50_v16, %v50_v16  ;;  %v857_v22 = vcombine.low %v50_v16, %v50_v16  ;;  %v830_v30 = vcombine.high %v20_v25, %v28_v26  ;;  %v44_v35 = vld [vmem:[%s1216_s1 + $0xd8] sm:$0xff]  ;;  %v51_v40 = vld [vmem:[%s1216_s1 + $0x110] sm:$0x33]  ;;  %v57_v43 = vld [vmem:[%s1218_s2] sm:$0xff] }
   0x8   :  { %v280_v27 = vsel %vm278_vm0, %v855_v20, 0  ;;  %v829_v37 = vcombine.low %v20_v25, %v28_v26  ;;  %v844_v38 = vcombine.high %v35_v31, %v43_v32  ;;  %v846_v39 = vcombine.high %v36_v34, %v44_v35  ;;  %v52_v41 = vld [vmem:[%s1216_s1 + $0x118] sm:$0x33]  ;;  %v21_v49 = vld [vmem:[%s1216_s1 + $0x20] sm:$0xff]  ;;  %v22_v51 = vld [vmem:[%s1216_s1 + $0x28] sm:$0xff]  ;;  %61 = vperm.xlu0 %920, %v57_v43  }
   0x9   :  { %v286_v29 = vsel %vm278_vm0, %v857_v22, 0  ;;  %v843_v42 = vcombine.low %v35_v31, %v43_v32  ;;  %v845_v44 = vcombine.low %v36_v34, %v44_v35  ;;  %v860_v45 = vcombine.high %v51_v40, %v51_v40  ;;  %v29_v50 = vld [vmem:[%s1216_s1 + $0x60] sm:$0xff]  ;;  %v30_v52 = vld [vmem:[%s1216_s1 + $0x68] sm:$0xff]  ;;  %v23_v11 = vld [vmem:[%s1216_s1 + $0x30] sm:$0xff] }
   0xa   :  { %330 = vmatpush1.bf16.msra.mxu0 %v839_v17  ;;  %373 = vmatpush1.bf16.msra.mxu1 %v841_v18  ;;  %v859_v46 = vcombine.low %v51_v40, %v51_v40  ;;  %v862_v47 = vcombine.high %v52_v41, %v52_v41  ;;  %v861_v48 = vcombine.low %v52_v41, %v52_v41  ;;  %v58_v53 = vld [vmem:[%s1218_s2 + $0x8] sm:$0xff]  ;;  %v37_v58 = vld [vmem:[%s1216_s1 + $0xa0] sm:$0xff]  ;;  %v31_v12 = vld [vmem:[%s1216_s1 + $0x70] sm:$0xff] }
   0xb   :  { %871 = vmatprep.subr.msk.bf16.mxu0 %vm278_vm0, %v856_v19  ;;  %873 = vmatprep.subr.msk.bf16.mxu1 %vm278_vm0, %v858_v21  ;;  %v832_v55 = vcombine.high %v21_v49, %v29_v50  ;;  %v834_v57 = vcombine.high %v22_v51, %v30_v52  ;;  %v45_v59 = vld [vmem:[%s1216_s1 + $0xe0] sm:$0xff]  ;;  %v38_v60 = vld [vmem:[%s1216_s1 + $0xa8] sm:$0xff]  ;;  %v831_v62 = vcombine.low %v21_v49, %v29_v50  ;;  %v24_v13 = vld [vmem:[%s1216_s1 + $0x38] sm:$0xff] }
   0xc   :  { %v292_v54 = vsel %vm278_vm0, %v859_v46, 0  ;;  %v298_v56 = vsel %vm278_vm0, %v861_v48, 0  ;;  %v46_v61 = vld [vmem:[%s1216_s1 + $0xe8] sm:$0xff]  ;;  %66 = vperm.xlu0 %920, %v58_v53   ;;  %v833_v63 = vcombine.low %v22_v51, %v30_v52  ;;  %v848_v0 = vcombine.high %v37_v58, %v45_v59  ;;  %v53_v2 = vld [vmem:[%s1216_s1 + $0x120] sm:$0x33]  ;;  %v32_v14 = vld [vmem:[%s1216_s1 + $0x78] sm:$0xff] }
   0xd   :  { %v850_v1 = vcombine.high %v38_v60, %v46_v61  ;;  %v54_v4 = vld [vmem:[%s1216_s1 + $0x128] sm:$0x33]  ;;  %v847_v5 = vcombine.low %v37_v58, %v45_v59  ;;  %v849_v6 = vcombine.low %v38_v60, %v46_v61  ;;  %v864_v7 = vcombine.high %v53_v2, %v53_v2  ;;  %v39_v19 = vld [vmem:[%s1216_s1 + $0xb0] sm:$0xff]  ;;  %v40_v21 = vld [vmem:[%s1216_s1 + $0xb8] sm:$0xff] }
   0xe   :  { %332 = vmatpush1.bf16.msra.mxu0 %v280_v27  ;;  %375 = vmatpush1.bf16.msra.mxu1 %v286_v29  ;;  %v863_v8 = vcombine.low %v53_v2, %v53_v2  ;;  %v866_v9 = vcombine.high %v54_v4, %v54_v4  ;;  %v865_v10 = vcombine.low %v54_v4, %v54_v4  ;;  %v47_v20 = vld [vmem:[%s1216_s1 + $0xf0] sm:$0xff]  ;;  %v48_v22 = vld [vmem:[%s1216_s1 + $0xf8] sm:$0xff]  ;;  %vm808_vm4 = vmor %vm807_vm3, %vm806_vm2 }
   0xf   :  { %413 = vmatprep.subr.bf16.mxu0 %v828_v28  ;;  %456 = vmatprep.subr.bf16.mxu1 %v830_v30  ;;  %v836_v16 = vcombine.high %v23_v11, %v31_v12  ;;  %v838_v18 = vcombine.high %v24_v13, %v32_v14  ;;  %v835_v23 = vcombine.low %v23_v11, %v31_v12  ;;  %v55_v27 = vld [vmem:[%s1216_s1 + $0x130] sm:$0x33]  ;;  %v56_v28 = vld [vmem:[%s1216_s1 + $0x138] sm:$0x33] }
  0x10   :  { %v304_v15 = vsel %vm278_vm0, %v863_v8, 0  ;;  %v310_v17 = vsel %vm278_vm0, %v865_v10, 0  ;;  %v837_v24 = vcombine.low %v24_v13, %v32_v14  ;;  %v852_v25 = vcombine.high %v39_v19, %v47_v20 }
  0x11   :  { %872 = vmatmul.mubr.msk.bf16.vlgmr.msra.gmra.mrb[0].mxu0 %vm274_vm1, %v1017_v33  ;;  %874 = vmatmul.mubr.msk.bf16.vlgmr.msra.gmra.mrb[0].mxu1 %vm274_vm1, %v1017_v33  ;;  %v854_v26 = vcombine.high %v40_v21, %v48_v22  ;;  %v851_v29 = vcombine.low %v39_v19, %v47_v20  ;;  %v853_v30 = vcombine.low %v40_v21, %v48_v22 }
  0x12   :  { %414 = vmatpush1.bf16.msra.mxu0 %v827_v36  ;;  %457 = vmatpush1.bf16.msra.mxu1 %v829_v37  ;;  %v868_v31 = vcombine.high %v55_v27, %v55_v27  ;;  %v867_v32 = vcombine.low %v55_v27, %v55_v27  ;;  %v870_v34 = vcombine.high %v56_v28, %v56_v28 }
  0x13   :  { %415 = vmatprep.subr.bf16.mxu0 %v844_v38  ;;  %458 = vmatprep.subr.bf16.mxu1 %v846_v39  ;;  %v869_v35 = vcombine.low %v56_v28, %v56_v28 }
  0x14   :  { %445 = vmatprep.mubr.bf16.mxu0 %v938_v3  ;;  %488 = vmatprep.mubr.bf16.mxu1 %v938_v3  ;;  %v316_v36 = vsel %vm278_vm0, %v867_v32, 0 }
  0x15   :  { %v322_v37 = vsel %vm278_vm0, %v869_v35, 0 }
  0x16   :  { %416 = vmatpush1.bf16.msra.mxu0 %v843_v42  ;;  %459 = vmatpush1.bf16.msra.mxu1 %v845_v44 }
  0x17   :  { %875 = vmatprep.subr.msk.bf16.mxu0 %vm278_vm0, %v860_v45  ;;  %877 = vmatprep.subr.msk.bf16.mxu1 %vm278_vm0, %v862_v47 }
  0x1a   :  { %418 = vmatpush1.bf16.msra.mxu0 %v292_v54  ;;  %461 = vmatpush1.bf16.msra.mxu1 %v298_v56 }
  0x1b   :  { %499 = vmatprep.subr.bf16.mxu0 %v832_v55  ;;  %542 = vmatprep.subr.bf16.mxu1 %v834_v57 }
  0x1d   :  { %876 = vmatmul.mubr.msk.bf16.vlgmr.msra.gmra.mrb[4].mxu0 %vm274_vm1, %v1017_v33  ;;  %878 = vmatmul.mubr.msk.bf16.vlgmr.msra.gmra.mrb[4].mxu1 %vm274_vm1, %v1017_v33 }
  0x1e   :  { %500 = vmatpush1.bf16.msra.mxu0 %v831_v62  ;;  %543 = vmatpush1.bf16.msra.mxu1 %v833_v63 }
  0x1f   :  { %501 = vmatprep.subr.bf16.mxu0 %v848_v0  ;;  %544 = vmatprep.subr.bf16.mxu1 %v850_v1 }
  0x20   :  { %531 = vmatprep.mubr.bf16.mxu0 %v938_v3  ;;  %574 = vmatprep.mubr.bf16.mxu1 %v938_v3 }
  0x22   :  { %502 = vmatpush1.bf16.msra.mxu0 %v847_v5  ;;  %545 = vmatpush1.bf16.msra.mxu1 %v849_v6 }
  0x23   :  { %879 = vmatprep.subr.msk.bf16.mxu0 %vm278_vm0, %v864_v7  ;;  %881 = vmatprep.subr.msk.bf16.mxu1 %vm278_vm0, %v866_v9 }
  0x26   :  { %504 = vmatpush1.bf16.msra.mxu0 %v304_v15  ;;  %547 = vmatpush1.bf16.msra.mxu1 %v310_v17 }
  0x27   :  { %585 = vmatprep.subr.bf16.mxu0 %v836_v16  ;;  %628 = vmatprep.subr.bf16.mxu1 %v838_v18 }
  0x29   :  { %880 = vmatmul.mubr.msk.bf16.vlgmr.msra.gmra.mrb[8].mxu0 %vm274_vm1, %v1017_v33  ;;  %882 = vmatmul.mubr.msk.bf16.vlgmr.msra.gmra.mrb[8].mxu1 %vm274_vm1, %v1017_v33 }
  0x2a   :  { %586 = vmatpush1.bf16.msra.mxu0 %v835_v23  ;;  %629 = vmatpush1.bf16.msra.mxu1 %v837_v24 }
  0x2b   :  { %587 = vmatprep.subr.bf16.mxu0 %v852_v25  ;;  %630 = vmatprep.subr.bf16.mxu1 %v854_v26 }
  0x2c   :  { %617 = vmatprep.mubr.bf16.mxu0 %v938_v3  ;;  %660 = vmatprep.mubr.bf16.mxu1 %v938_v3 }
  0x2e   :  { %588 = vmatpush1.bf16.msra.mxu0 %v851_v29  ;;  %631 = vmatpush1.bf16.msra.mxu1 %v853_v30 }
  0x2f   :  { %883 = vmatprep.subr.msk.bf16.mxu0 %vm278_vm0, %v868_v31  ;;  %885 = vmatprep.subr.msk.bf16.mxu1 %vm278_vm0, %v870_v34 }
  0x32   :  { %590 = vmatpush1.bf16.msra.mxu0 %v316_v36  ;;  %633 = vmatpush1.bf16.msra.mxu1 %v322_v37 }
  0x35   :  { %884 = vmatmul.mubr.msk.bf16.vlgmr.msra.gmra.mrb[12].mxu0 %vm274_vm1, %v1017_v33  ;;  %886 = vmatmul.mubr.msk.bf16.vlgmr.msra.gmra.mrb[12].mxu1 %vm274_vm1, %v1017_v33 }
  0x87   :  { %v1131_v38 = vpop.permute.xlu0 %61 }
  0x8b   :  { %v1133_v39 = vpop.permute.xlu0 %66 }
  0xe4   :  { %v361_v3 = vpop.f32.mrb[0].mxu0  ;;  %v404_v41 = vpop.f32.mrb[0].mxu1 }
  0xe5   :  { %v362_v40 = vadd.f32 %v361_v3, %v1131_v38  ;;  %v363_v42 = vpop.f32.mrb[1].mxu0  ;;  %v405_v43 = vadd.f32 %v404_v41, %v1131_v38  ;;  %v406_v45 = vpop.f32.mrb[1].mxu1 }
  0xe6   :  { %v364_v44 = vadd.f32 %v363_v42, %v1131_v38  ;;  %v365_v46 = vpop.f32.mrb[2].mxu0  ;;  %v407_v48 = vadd.f32 %v406_v45, %v1131_v38  ;;  %v408_v49 = vpop.f32.mrb[2].mxu1 }
  0xe7   :  { %v671_v47 = vmax.f32 %v362_v40, 0.0  ;;  %v366_v33 = vadd.f32 %v365_v46, %v1133_v39  ;;  %v367_v50 = vpop.f32.mrb[3].mxu0  ;;  %v673_v51 = vmax.f32 %v405_v43, 0.0  ;;  %v409_v53 = vadd.f32 %v408_v49, %v1133_v39  ;;  %v410_v55 = vpop.f32.mrb[3].mxu1 }
  0xe8   :  { %v672_v52 = vmax.f32 %v364_v44, 0.0  ;;  %v368_v54 = vadd.f32 %v367_v50, %v1133_v39  ;;  %v674_v56 = vmax.f32 %v407_v48, 0.0  ;;  %v411_v58 = vadd.f32 %v410_v55, %v1133_v39 }
  0xe9   :  { %v687_v57 = vmax.f32 %v366_v33, 0.0  ;;  %v689_v60 = vmax.f32 %v409_v53, 0.0 }
  0xea   :  { %v903_v59 = vpack.c.bf16 %v672_v52, %v671_v47  ;;  %v688_v61 = vmax.f32 %v368_v54, 0.0  ;;  %v904_v62 = vpack.c.bf16 %v674_v56, %v673_v51  ;;  %v690_v63 = vmax.f32 %v411_v58, 0.0 }
  0xec   :  { %799 = vst [vmem:[%s1219_s3] sm:$0xff] %v903_v59  ;;  %v911_v0 = vpack.c.bf16 %v688_v61, %v687_v57  ;;  %800 = vst [vmem:[%s1219_s3 + $0x8] sm:$0xff] %v904_v62  ;;  %v912_v1 = vpack.c.bf16 %v690_v63, %v689_v60 }
  0xee   :  { %810 = vst [vmem:[%s1219_s3 + $0x40] sm:$0xff] %v911_v0  ;;  %811 = vst [vmem:[%s1219_s3 + $0x48] sm:$0xff] %v912_v1 }
  0xf0   :  { %v447_v2 = vpop.f32.mrb[4].mxu0  ;;  %v490_v5 = vpop.f32.mrb[4].mxu1 }
  0xf1   :  { %v448_v4 = vadd.f32 %v447_v2, %v1131_v38  ;;  %v449_v6 = vpop.f32.mrb[5].mxu0  ;;  %v491_v7 = vadd.f32 %v490_v5, %v1131_v38  ;;  %v492_v9 = vpop.f32.mrb[5].mxu1 }
  0xf2   :  { %v450_v8 = vadd.f32 %v449_v6, %v1131_v38  ;;  %v451_v10 = vpop.f32.mrb[6].mxu0  ;;  %v493_v12 = vadd.f32 %v492_v9, %v1131_v38  ;;  %v494_v14 = vpop.f32.mrb[6].mxu1 }
  0xf3   :  { %v675_v11 = vmax.f32 %v448_v4, 0.0  ;;  %v452_v13 = vadd.f32 %v451_v10, %v1133_v39  ;;  %v453_v15 = vpop.f32.mrb[7].mxu0  ;;  %v677_v16 = vmax.f32 %v491_v7, 0.0  ;;  %v495_v18 = vadd.f32 %v494_v14, %v1133_v39  ;;  %v496_v20 = vpop.f32.mrb[7].mxu1 }
  0xf4   :  { %v676_v17 = vmax.f32 %v450_v8, 0.0  ;;  %v454_v19 = vadd.f32 %v453_v15, %v1133_v39  ;;  %v678_v21 = vmax.f32 %v493_v12, 0.0  ;;  %v497_v23 = vadd.f32 %v496_v20, %v1133_v39 }
  0xf5   :  { %v691_v22 = vmax.f32 %v452_v13, 0.0  ;;  %v693_v25 = vmax.f32 %v495_v18, 0.0 }
  0xf6   :  { %v905_v24 = vpack.c.bf16 %v676_v17, %v675_v11  ;;  %v692_v26 = vmax.f32 %v454_v19, 0.0  ;;  %v906_v27 = vpack.c.bf16 %v678_v21, %v677_v16  ;;  %v694_v28 = vmax.f32 %v497_v23, 0.0 }
  0xf8   :  { %801 = vst [vmem:[%s1219_s3 + $0x10] sm:$0xff] %v905_v24  ;;  %v913_v29 = vpack.c.bf16 %v692_v26, %v691_v22  ;;  %802 = vst [vmem:[%s1219_s3 + $0x18] sm:$0xff] %v906_v27  ;;  %v914_v30 = vpack.c.bf16 %v694_v28, %v693_v25 }
  0xfa   :  { %812 = vst [vmem:[%s1219_s3 + $0x50] sm:$0xff] %v913_v29  ;;  %813 = vst [vmem:[%s1219_s3 + $0x58] sm:$0xff] %v914_v30 }
  0xfc   :  { %v533_v31 = vpop.f32.mrb[8].mxu0  ;;  %v576_v34 = vpop.f32.mrb[8].mxu1 }
  0xfd   :  { %v534_v32 = vadd.f32 %v533_v31, %v1131_v38  ;;  %v535_v35 = vpop.f32.mrb[9].mxu0  ;;  %v577_v36 = vadd.f32 %v576_v34, %v1131_v38  ;;  %v578_v3 = vpop.f32.mrb[9].mxu1 }
  0xfe   :  { %v536_v37 = vadd.f32 %v535_v35, %v1131_v38  ;;  %v537_v40 = vpop.f32.mrb[10].mxu0  ;;  %v579_v42 = vadd.f32 %v578_v3, %v1131_v38  ;;  %v580_v44 = vpop.f32.mrb[10].mxu1 }
  0xff   :  { %v679_v41 = vmax.f32 %v534_v32, 0.0  ;;  %v538_v43 = vadd.f32 %v537_v40, %v1133_v39  ;;  %v539_v45 = vpop.f32.mrb[11].mxu0  ;;  %v681_v46 = vmax.f32 %v577_v36, 0.0  ;;  %v581_v48 = vadd.f32 %v580_v44, %v1133_v39  ;;  %v582_v49 = vpop.f32.mrb[11].mxu1 }
 0x100   :  { %v680_v47 = vmax.f32 %v536_v37, 0.0  ;;  %v540_v33 = vadd.f32 %v539_v45, %v1133_v39  ;;  %v682_v50 = vmax.f32 %v579_v42, 0.0  ;;  %v583_v52 = vadd.f32 %v582_v49, %v1133_v39 }
 0x101   :  { %v695_v51 = vmax.f32 %v538_v43, 0.0  ;;  %v697_v54 = vmax.f32 %v581_v48, 0.0 }
 0x102   :  { %v907_v53 = vpack.c.bf16 %v680_v47, %v679_v41  ;;  %v696_v55 = vmax.f32 %v540_v33, 0.0  ;;  %v908_v56 = vpack.c.bf16 %v682_v50, %v681_v46  ;;  %v698_v57 = vmax.f32 %v583_v52, 0.0 }
 0x104   :  { %803 = vst [vmem:[%s1219_s3 + $0x20] sm:$0xff] %v907_v53  ;;  %v915_v58 = vpack.c.bf16 %v696_v55, %v695_v51  ;;  %804 = vst [vmem:[%s1219_s3 + $0x28] sm:$0xff] %v908_v56  ;;  %v916_v59 = vpack.c.bf16 %v698_v57, %v697_v54 }
 0x106   :  { %814 = vst [vmem:[%s1219_s3 + $0x60] sm:$0xff] %v915_v58  ;;  %815 = vst [vmem:[%s1219_s3 + $0x68] sm:$0xff] %v916_v59 }
 0x108   :  { %v619_v60 = vpop.f32.mrb[12].mxu0  ;;  %v662_v62 = vpop.f32.mrb[12].mxu1 }
 0x109   :  { %v620_v61 = vadd.f32 %v619_v60, %v1131_v38  ;;  %v621_v63 = vpop.f32.mrb[13].mxu0  ;;  %v663_v0 = vadd.f32 %v662_v62, %v1131_v38  ;;  %v664_v2 = vpop.f32.mrb[13].mxu1 }
 0x10a   :  { %v622_v1 = vadd.f32 %v621_v63, %v1131_v38  ;;  %v623_v4 = vpop.f32.mrb[14].mxu0  ;;  %v665_v6 = vadd.f32 %v664_v2, %v1131_v38  ;;  %v666_v8 = vpop.f32.mrb[14].mxu1 }
 0x10b   :  { %v683_v5 = vmax.f32 %v620_v61, 0.0  ;;  %v624_v7 = vadd.f32 %v623_v4, %v1133_v39  ;;  %v625_v9 = vpop.f32.mrb[15].mxu0  ;;  %v685_v10 = vmax.f32 %v663_v0, 0.0  ;;  %v667_v12 = vadd.f32 %v666_v8, %v1133_v39  ;;  %v668_v14 = vpop.f32.mrb[15].mxu1 }
 0x10c   :  { %v684_v11 = vmax.f32 %v622_v1, 0.0  ;;  %v626_v13 = vadd.f32 %v625_v9, %v1133_v39  ;;  %v686_v15 = vmax.f32 %v665_v6, 0.0  ;;  %v669_v17 = vadd.f32 %v668_v14, %v1133_v39 }
 0x10d   :  { %v699_v16 = vmax.f32 %v624_v7, 0.0  ;;  %v701_v38 = vmax.f32 %v667_v12, 0.0 }
 0x10e   :  { %v909_v18 = vpack.c.bf16 %v684_v11, %v683_v5  ;;  %v700_v19 = vmax.f32 %v626_v13, 0.0  ;;  %v910_v20 = vpack.c.bf16 %v686_v15, %v685_v10  ;;  %v702_v21 = vmax.f32 %v669_v17, 0.0 }
 0x110   :  { %805 = vst [vmem:[%s1219_s3 + $0x30] sm:$0xff] %v909_v18  ;;  %v917_v22 = vpack.c.bf16 %v700_v19, %v699_v16  ;;  %809 = vst.msk [vmem:[%s1219_s3 + $0x38] sm:$0xff] %vm808_vm4, %v910_v20  ;;  %v918_v23 = vpack.c.bf16 %v702_v21, %v701_v38 }
 0x112   :  { %816 = vst [vmem:[%s1219_s3 + $0x70] sm:$0xff] %v917_v22  ;;  %817 = vst.msk [vmem:[%s1219_s3 + $0x78] sm:$0xff] %vm808_vm4, %v918_v23 }

// kernel: forward.5
= control target key start
LH: loop header
LB: loop body
LE: loop exit
PB: predicated region body
PF: predicated region fallthrough
CT: control target
= control target key end

     0   :  { %v592_v1 = vmov 0   ;;  %vm277_vm0 = vcmask 130048   ;;  %vm455_vm1 = vcmask 1043456   ;;  %vm456_vm2 = vcmask 539652   ;;  %s786_s1 = inlined_call_operand.vmem [shape: bf16[144,450], index: 1, kind: input, shape index: {}]   ;;  %s787_s0 = inlined_call_operand.vmem [shape: bf16[32,144], index: 0, kind: input, shape index: {}]   ;;  %s788_s2 = inlined_call_operand.vmem [shape: f32[32,1], index: 2, kind: input, shape index: {}]   ;;  %s789_s3 = inlined_call_operand.vmem [shape: bf16[32,450], index: 3, kind: output, shape index: {}]  }
   0x1   :  { %v532_v0 = vld [vmem:[%s786_s1 + $0x4] ss:$16 sps:$4 sm:$0xff]   ;;  %530 = vset.pattern.permute.xlu0 %v592_v1  ;;  %531 = vset.pattern.permute.xlu1 %v592_v1  ;;  %v534_v2 = vld [vmem:[%s786_s1 + $0xc] ss:$16 sps:$4 sm:$0xff]   ;;  %v536_v3 = vld [vmem:[%s786_s1] ss:$16 sps:$4 sm:$0xff]  }
   0x2   :  { %284 = vmatprep.subr.bf16.mxu0 %v532_v0  ;;  %v537_v4 = vld [vmem:[%s786_s1 + $0x8] ss:$16 sps:$4 sm:$0xff]   ;;  %337 = vmatprep.subr.bf16.mxu1 %v534_v2  ;;  %v538_v5 = vld [vmem:[%s786_s1 + $0x24] ss:$16 sps:$4 sm:$0xff]   ;;  %v540_v6 = vld [vmem:[%s786_s1 + $0x2c] ss:$16 sps:$4 sm:$0xff]  }
   0x3   :  { %285 = vmatpush1.bf16.msra.mxu0 %v536_v3  ;;  %338 = vmatpush1.bf16.msra.mxu1 %v537_v4  ;;  %v542_v7 = vld [vmem:[%s786_s1 + $0x20] ss:$16 sps:$4 sm:$0xff]   ;;  %v543_v8 = vld [vmem:[%s786_s1 + $0x28] ss:$16 sps:$4 sm:$0xff]   ;;  %v544_v9 = vld [vmem:[%s786_s1 + $0x44] ss:$16 sps:$4 sm:$0xff]  }
   0x4   :  { %286 = vmatprep.subr.bf16.mxu0 %v538_v5  ;;  %339 = vmatprep.subr.bf16.mxu1 %v540_v6  ;;  %v546_v10 = vld [vmem:[%s786_s1 + $0x4c] ss:$16 sps:$4 sm:$0xff]   ;;  %v548_v11 = vld [vmem:[%s786_s1 + $0x40] ss:$16 sps:$4 sm:$0xff]   ;;  %v549_v12 = vld [vmem:[%s786_s1 + $0x48] ss:$16 sps:$4 sm:$0xff]  }
   0x5   :  { %v550_v13 = vld [vmem:[%s786_s1 + $0x64] ss:$16 sps:$4 sm:$0xff]   ;;  %v552_v14 = vld [vmem:[%s786_s1 + $0x6c] ss:$16 sps:$4 sm:$0xff]   ;;  %v554_v15 = vld [vmem:[%s786_s1 + $0x60] ss:$16 sps:$4 sm:$0xff]  }
   0x6   :  { %v555_v16 = vld [vmem:[%s786_s1 + $0x68] ss:$16 sps:$4 sm:$0xff]   ;;  %v556_v17 = vld [vmem:[%s786_s1 + $0x84] ss:$16 sps:$4 sm:$0xff]   ;;  %v558_v18 = vld [vmem:[%s786_s1 + $0x8c] ss:$16 sps:$4 sm:$0xff]  }
   0x7   :  { %287 = vmatpush1.bf16.msra.mxu0 %v542_v7  ;;  %340 = vmatpush1.bf16.msra.mxu1 %v543_v8  ;;  %v560_v19 = vld [vmem:[%s786_s1 + $0x80] ss:$16 sps:$4 sm:$0xff]   ;;  %v561_v20 = vld [vmem:[%s786_s1 + $0x88] ss:$16 sps:$4 sm:$0xff]   ;;  %v562_v21 = vld [vmem:[%s786_s1 + $0xa4] ss:$16 sps:$4 sm:$0xff]  }
   0x8   :  { %288 = vmatprep.subr.bf16.mxu0 %v544_v9  ;;  %341 = vmatprep.subr.bf16.mxu1 %v546_v10  ;;  %v564_v22 = vld [vmem:[%s786_s1 + $0xac] ss:$16 sps:$4 sm:$0xff]   ;;  %v566_v23 = vld [vmem:[%s786_s1 + $0xa0] ss:$16 sps:$4 sm:$0xff]   ;;  %v567_v24 = vld [vmem:[%s786_s1 + $0xa8] ss:$16 sps:$4 sm:$0xff]  }
   0x9   :  { %v568_v25 = vld [vmem:[%s786_s1 + $0xc4] ss:$16 sps:$4 sm:$0xff]   ;;  %v570_v26 = vld [vmem:[%s786_s1 + $0xcc] ss:$16 sps:$4 sm:$0xff]   ;;  %v572_v27 = vld [vmem:[%s786_s1 + $0xc0] ss:$16 sps:$4 sm:$0xff]  }
   0xa   :  { %v573_v28 = vld [vmem:[%s786_s1 + $0xc8] ss:$16 sps:$4 sm:$0xff]   ;;  %v574_v29 = vld [vmem:[%s786_s1 + $0xe4] ss:$16 sps:$4 sm:$0xff]   ;;  %v576_v30 = vld [vmem:[%s786_s1 + $0xec] ss:$16 sps:$4 sm:$0xff]  }
   0xb   :  { %289 = vmatpush1.bf16.msra.mxu0 %v548_v11  ;;  %342 = vmatpush1.bf16.msra.mxu1 %v549_v12  ;;  %v588_v31 = vld [vmem:[%s787_s0 + $0x4] ss:$8 sps:$4 sm:$0xff]   ;;  %v57_v33 = vld [vmem:[%s788_s2 + $0x10] sm:$0xff]  ;;  %v579_v35 = vld [vmem:[%s786_s1 + $0xe8] ss:$16 sps:$4 sm:$0xff]  }
   0xc   :  { %290 = vmatprep.subr.bf16.mxu0 %v550_v13  ;;  %343 = vmatprep.subr.bf16.mxu1 %v552_v14  ;;  %v55_v32 = vld [vmem:[%s788_s2] sm:$0xff]  ;;  %v582_v37 = vld [vmem:[%s786_s1 + $0x10c] ss:$16 sps:$4 sm:$0xff]   ;;  %v585_v41 = vld [vmem:[%s786_s1 + $0x108] ss:$16 sps:$4 sm:$0xff]  }
   0xd   :  { %509 = vmatprep.mubr.msk.bf16.mxu0 %vm277_vm0, %v588_v31  ;;  %511 = vmatprep.mubr.msk.bf16.mxu1 %vm277_vm0, %v588_v31  ;;  %v578_v34 = vld [vmem:[%s786_s1 + $0xe0] ss:$16 sps:$4 sm:$0xff]   ;;  %v580_v36 = vld [vmem:[%s786_s1 + $0x104] ss:$16 sps:$4 sm:$0xff]   ;;  %v56_v38 = vld [vmem:[%s788_s2 + $0x8] sm:$0xff] }
   0xe   :  { %61 = vperm.xlu0 %530, %v55_v32   ;;  %71 = vperm.xlu1 %531, %v57_v33   ;;  %v58_v39 = vld [vmem:[%s788_s2 + $0x18] sm:$0xff]  ;;  %v584_v40 = vld [vmem:[%s786_s1 + $0x100] ss:$16 sps:$4 sm:$0xff]   ;;  %vm750_vm3 = vmor %vm456_vm2, %vm455_vm1 }
   0xf   :  { %291 = vmatpush1.bf16.msra.mxu0 %v554_v15  ;;  %344 = vmatpush1.bf16.msra.mxu1 %v555_v16  ;;  %v586_v42 = vld [vmem:[%s787_s0] ss:$8 sps:$4 sm:$0xff]   ;;  %v589_v43 = vld [vmem:[%s787_s0 + $0x14] ss:$8 sps:$4 sm:$0xff]   ;;  %v591_v44 = vld [vmem:[%s787_s0 + $0x10] ss:$8 sps:$4 sm:$0xff]  }
  0x10   :  { %292 = vmatprep.subr.bf16.mxu0 %v556_v17  ;;  %345 = vmatprep.subr.bf16.mxu1 %v558_v18 }
  0x12   :  { %66 = vperm.xlu0 %530, %v56_v38   ;;  %76 = vperm.xlu1 %531, %v58_v39  }
  0x13   :  { %293 = vmatpush1.bf16.msra.mxu0 %v560_v19  ;;  %346 = vmatpush1.bf16.msra.mxu1 %v561_v20 }
  0x14   :  { %294 = vmatprep.subr.bf16.mxu0 %v562_v21  ;;  %347 = vmatprep.subr.bf16.mxu1 %v564_v22 }
  0x17   :  { %295 = vmatpush1.bf16.msra.mxu0 %v566_v23  ;;  %348 = vmatpush1.bf16.msra.mxu1 %v567_v24 }
  0x18   :  { %296 = vmatprep.subr.bf16.mxu0 %v568_v25  ;;  %349 = vmatprep.subr.bf16.mxu1 %v570_v26 }
  0x1b   :  { %297 = vmatpush1.bf16.msra.mxu0 %v572_v27  ;;  %350 = vmatpush1.bf16.msra.mxu1 %v573_v28 }
  0x1c   :  { %298 = vmatprep.subr.bf16.mxu0 %v574_v29  ;;  %351 = vmatprep.subr.bf16.mxu1 %v576_v30 }
  0x1f   :  { %299 = vmatpush1.bf16.msra.mxu0 %v578_v34  ;;  %352 = vmatpush1.bf16.msra.mxu1 %v579_v35 }
  0x20   :  { %300 = vmatprep.subr.bf16.mxu0 %v580_v36  ;;  %353 = vmatprep.subr.bf16.mxu1 %v582_v37 }
  0x23   :  { %301 = vmatpush1.bf16.msra.mxu0 %v584_v40  ;;  %354 = vmatpush1.bf16.msra.mxu1 %v585_v41 }
  0x26   :  { %317 = vmatmul.mubr.bf16.vlgmr.msra.gmra.mrb[0].mxu0 %v586_v42  ;;  %370 = vmatmul.mubr.bf16.vlgmr.msra.gmra.mrb[0].mxu1 %v586_v42 }
  0x27   :  { %510 = vmatprep.mubr.msk.bf16.mxu0 %vm277_vm0, %v589_v43  ;;  %512 = vmatprep.mubr.msk.bf16.mxu1 %vm277_vm0, %v589_v43 }
  0x2e   :  { %327 = vmatmul.mubr.bf16.gmra.mrb[4].mxu0 %v591_v44  ;;  %380 = vmatmul.mubr.bf16.gmra.mrb[4].mxu1 %v591_v44 }
  0x8d   :  { %v62_v45 = vpop.permute.xlu0 %61  ;;  %v72_v47 = vpop.permute.xlu1 %71 }
  0x91   :  { %v67_v46 = vpop.permute.xlu0 %66  ;;  %v77_v11 = vpop.permute.xlu1 %76 }
  0xf9   :  { %v318_v48 = vpop.f32.mrb[0].mxu0  ;;  %v371_v49 = vpop.f32.mrb[0].mxu1 }
  0xfa   :  { %v319_v50 = vadd.f32 %v318_v48, %v62_v45  ;;  %v372_v51 = vadd.f32 %v371_v49, %v62_v45  ;;  %v320_v52 = vpop.f32.mrb[1].mxu0  ;;  %v373_v53 = vpop.f32.mrb[1].mxu1 }
  0xfb   :  { %v321_v54 = vadd.f32 %v320_v52, %v62_v45  ;;  %v374_v55 = vadd.f32 %v373_v53, %v62_v45  ;;  %v322_v56 = vpop.f32.mrb[2].mxu0  ;;  %v375_v57 = vpop.f32.mrb[2].mxu1 }
  0xfc   :  { %v390_v58 = vmax.f32 %v319_v50, 0.0  ;;  %v392_v59 = vmax.f32 %v372_v51, 0.0  ;;  %v323_v60 = vadd.f32 %v322_v56, %v67_v46  ;;  %v376_v61 = vadd.f32 %v375_v57, %v67_v46  ;;  %v324_v62 = vpop.f32.mrb[3].mxu0  ;;  %v377_v63 = vpop.f32.mrb[3].mxu1 }
  0xfd   :  { %v391_v0 = vmax.f32 %v321_v54, 0.0  ;;  %v393_v1 = vmax.f32 %v374_v55, 0.0  ;;  %v325_v2 = vadd.f32 %v324_v62, %v67_v46  ;;  %v378_v3 = vadd.f32 %v377_v63, %v67_v46 }
  0xfe   :  { %v394_v5 = vmax.f32 %v323_v60, 0.0  ;;  %v396_v6 = vmax.f32 %v376_v61, 0.0 }
  0xff   :  { %v521_v7 = vpack.c.bf16 %v391_v0, %v390_v58  ;;  %v522_v8 = vpack.c.bf16 %v393_v1, %v392_v59  ;;  %v395_v9 = vmax.f32 %v325_v2, 0.0  ;;  %v397_v10 = vmax.f32 %v378_v3, 0.0 }
 0x101   :  { %454 = vst [vmem:[%s789_s3] sm:$0xff] %v521_v7  ;;  %458 = vst.msk [vmem:[%s789_s3 + $0x8] sm:$0xff] %vm750_vm3, %v522_v8  ;;  %v523_v12 = vpack.c.bf16 %v395_v9, %v394_v5  ;;  %v524_v13 = vpack.c.bf16 %v397_v10, %v396_v6  ;;  %v328_v14 = vpop.f32.mrb[4].mxu0  ;;  %v381_v15 = vpop.f32.mrb[4].mxu1 }
 0x102   :  { %v329_v16 = vadd.f32 %v328_v14, %v72_v47  ;;  %v382_v17 = vadd.f32 %v381_v15, %v72_v47  ;;  %v330_v18 = vpop.f32.mrb[5].mxu0  ;;  %v383_v19 = vpop.f32.mrb[5].mxu1 }
 0x103   :  { %459 = vst [vmem:[%s789_s3 + $0x10] sm:$0xff] %v523_v12  ;;  %460 = vst.msk [vmem:[%s789_s3 + $0x18] sm:$0xff] %vm750_vm3, %v524_v13  ;;  %v331_v20 = vadd.f32 %v330_v18, %v72_v47  ;;  %v384_v21 = vadd.f32 %v383_v19, %v72_v47  ;;  %v332_v22 = vpop.f32.mrb[6].mxu0  ;;  %v385_v23 = vpop.f32.mrb[6].mxu1 }
 0x104   :  { %v398_v24 = vmax.f32 %v329_v16, 0.0  ;;  %v400_v25 = vmax.f32 %v382_v17, 0.0  ;;  %v333_v26 = vadd.f32 %v332_v22, %v77_v11  ;;  %v386_v27 = vadd.f32 %v385_v23, %v77_v11  ;;  %v334_v28 = vpop.f32.mrb[7].mxu0  ;;  %v387_v29 = vpop.f32.mrb[7].mxu1 }
 0x105   :  { %v399_v30 = vmax.f32 %v331_v20, 0.0  ;;  %v401_v31 = vmax.f32 %v384_v21, 0.0  ;;  %v335_v32 = vadd.f32 %v334_v28, %v77_v11  ;;  %v388_v33 = vadd.f32 %v387_v29, %v77_v11 }
 0x106   :  { %v402_v34 = vmax.f32 %v333_v26, 0.0  ;;  %v404_v35 = vmax.f32 %v386_v27, 0.0 }
 0x107   :  { %v525_v36 = vpack.c.bf16 %v399_v30, %v398_v24  ;;  %v526_v37 = vpack.c.bf16 %v401_v31, %v400_v25  ;;  %v403_v38 = vmax.f32 %v335_v32, 0.0  ;;  %v405_v39 = vmax.f32 %v388_v33, 0.0 }
 0x109   :  { %461 = vst [vmem:[%s789_s3 + $0x20] sm:$0xff] %v525_v36  ;;  %462 = vst.msk [vmem:[%s789_s3 + $0x28] sm:$0xff] %vm750_vm3, %v526_v37  ;;  %v527_v40 = vpack.c.bf16 %v403_v38, %v402_v34  ;;  %v528_v41 = vpack.c.bf16 %v405_v39, %v404_v35 }
 0x10b   :  { %463 = vst [vmem:[%s789_s3 + $0x30] sm:$0xff] %v527_v40  ;;  %464 = vst.msk [vmem:[%s789_s3 + $0x38] sm:$0xff] %vm750_vm3, %v528_v41 }

// kernel: forward.6
= control target key start
LH: loop header
LB: loop body
LE: loop exit
PB: predicated region body
PF: predicated region fallthrough
CT: control target
= control target key end

     0   :  { %v640_v1 = vmov 0   ;;  %vm283_vm0 = vcmask 261120   ;;  %vm466_vm1 = vcmask 797696   ;;  %s811_s1 = inlined_call_operand.vmem [shape: bf16[288,98], index: 1, kind: input, shape index: {}]   ;;  %s812_s0 = inlined_call_operand.vmem [shape: bf16[64,288], index: 0, kind: input, shape index: {}]   ;;  %s813_s2 = inlined_call_operand.vmem [shape: f32[64,1], index: 2, kind: input, shape index: {}]   ;;  %s814_s3 = inlined_call_operand.vmem [shape: bf16[64,98], index: 3, kind: output, shape index: {}]  }
   0x1   :  { %v606_v0 = vld [vmem:[%s811_s1 + $0x40] sm:$0xff]   ;;  %605 = vset.pattern.permute.xlu1 %v640_v1  ;;  %604 = vset.pattern.permute.xlu0 %v640_v1  ;;  %v608_v3 = vld [vmem:[%s811_s1 + $0x48] sm:$0xff]   ;;  %v610_v5 = vld [vmem:[%s811_s1 + $0x50] sm:$0xff]  }
   0x2   :  { %v607_v2 = vld [vmem:[%s811_s1] sm:$0xff]   ;;  %529 = vmatprep.subr.bf16.mxu0 %v606_v0  ;;  %587 = vmatprep.subr.bf16.mxu1 %v606_v0  ;;  %v609_v4 = vld [vmem:[%s811_s1 + $0x8] sm:$0xff]   ;;  %v611_v6 = vld [vmem:[%s811_s1 + $0x10] sm:$0xff]  }
   0x3   :  { %530 = vmatpush3.bf16.msra.mxu0 %v607_v2  ;;  %595 = vmatpush3.bf16.msra.mxu1 %v607_v2  ;;  %v612_v7 = vld [vmem:[%s811_s1 + $0x58] sm:$0xff]   ;;  %v614_v9 = vld [vmem:[%s811_s1 + $0x60] sm:$0xff]   ;;  %v616_v11 = vld [vmem:[%s811_s1 + $0x68] sm:$0xff]  }
   0x4   :  { %531 = vmatprep.subr.bf16.mxu0 %v608_v3  ;;  %588 = vmatprep.subr.bf16.mxu1 %v608_v3  ;;  %v613_v8 = vld [vmem:[%s811_s1 + $0x18] sm:$0xff]   ;;  %v615_v10 = vld [vmem:[%s811_s1 + $0x20] sm:$0xff]   ;;  %v617_v14 = vld [vmem:[%s811_s1 + $0x28] sm:$0xff]  }
   0x5   :  { %v624_v12 = vld [vmem:[%s812_s0 + $0x4] ss:$12 sps:$4 sm:$0xff]   ;;  %v627_v13 = vld [vmem:[%s812_s0 + $0x4c] ss:$12 sps:$4 sm:$0xff]   ;;  %v625_v23 = vld [vmem:[%s812_s0 + $0x48] ss:$12 sps:$4 sm:$0xff]  }
   0x6   :  { %v618_v15 = vld [vmem:[%s811_s1 + $0x70] sm:$0xff]   ;;  %328 = vmatprep.mubr.bf16.mxu0 %v624_v12  ;;  %352 = vmatprep.mubr.bf16.mxu1 %v627_v13  ;;  %v620_v17 = vld [vmem:[%s811_s1 + $0x78] sm:$0xff]   ;;  %v67_v20 = vld [vmem:[%s813_s2] sm:$0xff] }
   0x7   :  { %532 = vmatpush3.bf16.msra.mxu0 %v609_v4  ;;  %596 = vmatpush3.bf16.msra.mxu1 %v609_v4  ;;  %v619_v16 = vld [vmem:[%s811_s1 + $0x30] sm:$0xff]   ;;  %v621_v18 = vld [vmem:[%s811_s1 + $0x38] sm:$0xff]   ;;  %v628_v21 = vld [vmem:[%s811_s1 + $0x80] sm:$0xff]  }
   0x8   :  { %533 = vmatprep.subr.bf16.mxu0 %v610_v5  ;;  %589 = vmatprep.subr.bf16.mxu1 %v610_v5  ;;  %v69_v19 = vld [vmem:[%s813_s2 + $0x10] sm:$0xff]  ;;  %v622_v22 = vld [vmem:[%s812_s0] ss:$12 sps:$4 sm:$0xff]   ;;  %v70_v24 = vld [vmem:[%s813_s2 + $0x18] sm:$0xff] }
   0x9   :  { %87 = vperm.xlu1 %605, %v69_v19   ;;  %77 = vperm.xlu0 %604, %v67_v20   ;;  %v68_v25 = vld [vmem:[%s813_s2 + $0x8] sm:$0xff]  ;;  %v71_v30 = vld [vmem:[%s813_s2 + $0x20] sm:$0xff]  ;;  %v74_v33 = vld [vmem:[%s813_s2 + $0x38] sm:$0xff] }
   0xa   :  { %v630_v26 = vld [vmem:[%s812_s0 + $0x1c] ss:$12 sps:$4 sm:$0xff]   ;;  %v633_v31 = vld [vmem:[%s812_s0 + $0x18] ss:$12 sps:$4 sm:$0xff]   ;;  %v634_v32 = vld [vmem:[%s812_s0 + $0x20] ss:$12 sps:$4 sm:$0xff]  }
   0xb   :  { %534 = vmatpush3.bf16.msra.mxu0 %v611_v6  ;;  %597 = vmatpush3.bf16.msra.mxu1 %v611_v6  ;;  %v629_v27 = vld [vmem:[%s811_s1 + $0x88] sm:$0xff]   ;;  %v73_v34 = vld [vmem:[%s813_s2 + $0x30] sm:$0xff]  ;;  %v637_v36 = vld [vmem:[%s812_s0 + $0x38] ss:$12 sps:$4 sm:$0xff]  }
   0xc   :  { %535 = vmatprep.subr.bf16.mxu0 %v612_v7  ;;  %590 = vmatprep.subr.bf16.mxu1 %v612_v7  ;;  %v632_v28 = vld [vmem:[%s812_s0 + $0x8] ss:$12 sps:$4 sm:$0xff]   ;;  %v638_v37 = vld [vmem:[%s812_s0 + $0x30] ss:$12 sps:$4 sm:$0xff]  }
   0xd   :  { %92 = vperm.xlu1 %605, %v70_v24   ;;  %82 = vperm.xlu0 %604, %v68_v25   ;;  %v72_v29 = vld [vmem:[%s813_s2 + $0x28] sm:$0xff]  ;;  %v635_v35 = vld [vmem:[%s812_s0 + $0x34] ss:$12 sps:$4 sm:$0xff]   ;;  %v639_v38 = vld [vmem:[%s812_s0 + $0x50] ss:$12 sps:$4 sm:$0xff]  }
   0xf   :  { %536 = vmatpush3.bf16.msra.mxu0 %v613_v8  ;;  %598 = vmatpush3.bf16.msra.mxu1 %v613_v8 }
  0x10   :  { %537 = vmatprep.subr.bf16.mxu0 %v614_v9  ;;  %591 = vmatprep.subr.bf16.mxu1 %v614_v9 }
  0x11   :  { %102 = vperm.xlu1 %605, %v72_v29   ;;  %97 = vperm.xlu0 %604, %v71_v30  }
  0x13   :  { %538 = vmatpush3.bf16.msra.mxu0 %v615_v10  ;;  %599 = vmatpush3.bf16.msra.mxu1 %v615_v10 }
  0x14   :  { %539 = vmatprep.subr.bf16.mxu0 %v616_v11  ;;  %592 = vmatprep.subr.bf16.mxu1 %v616_v11 }
  0x15   :  { %112 = vperm.xlu1 %605, %v74_v33   ;;  %107 = vperm.xlu0 %604, %v73_v34  }
  0x17   :  { %540 = vmatpush3.bf16.msra.mxu0 %v617_v14  ;;  %600 = vmatpush3.bf16.msra.mxu1 %v617_v14 }
  0x18   :  { %541 = vmatprep.subr.bf16.mxu0 %v618_v15  ;;  %593 = vmatprep.subr.bf16.mxu1 %v618_v15 }
  0x1b   :  { %542 = vmatpush3.bf16.msra.mxu0 %v619_v16  ;;  %601 = vmatpush3.bf16.msra.mxu1 %v619_v16 }
  0x1c   :  { %543 = vmatprep.subr.bf16.mxu0 %v620_v17  ;;  %594 = vmatprep.subr.bf16.mxu1 %v620_v17 }
  0x1f   :  { %544 = vmatpush3.bf16.msra.mxu0 %v621_v18  ;;  %602 = vmatpush3.bf16.msra.mxu1 %v621_v18 }
  0x20   :  { %575 = vmatprep.subr.bf16.mxu1 %v628_v21 }
  0x22   :  { %329 = vmatmul.mubr.bf16.vlgmr.msra.gmra.mrb[0].mxu0 %v622_v22  ;;  %353 = vmatmul.mubr.bf16.vlgmr.msra.gmra.mrb[0].mxu1 %v625_v23 }
  0x23   :  { %576 = vmatpush3.bf16.msra.mxu1 %v628_v21  ;;  %336 = vmatprep.mubr.bf16.mxu0 %v630_v26 }
  0x24   :  { %577 = vmatprep.subr.bf16.mxu1 %v629_v27  ;;  %579 = vmatprep.mubr.msk.bf16.mxu1 %vm283_vm0, %v632_v28 }
  0x27   :  { %578 = vmatpush3.bf16.msra.mxu1 %v629_v27 }
  0x2a   :  { %337 = vmatmul.mubr.bf16.gmra.mrb[4].mxu0 %v633_v31  ;;  %580 = vmatmul.mubr.msk.bf16.vlgmr.msra.gmra.mrb[4].mxu1 %vm283_vm0, %v634_v32 }
  0x2b   :  { %344 = vmatprep.mubr.bf16.mxu0 %v635_v35  ;;  %583 = vmatprep.mubr.msk.bf16.mxu1 %vm283_vm0, %v637_v36 }
  0x32   :  { %345 = vmatmul.mubr.bf16.gmra.mrb[8].mxu0 %v638_v37  ;;  %584 = vmatmul.mubr.msk.bf16.gmra.mrb[8].mxu1 %vm283_vm0, %v639_v38 }
  0x88   :  { %v88_v39 = vpop.permute.xlu1 %87  ;;  %v78_v40 = vpop.permute.xlu0 %77 }
  0x8c   :  { %v93_v41 = vpop.permute.xlu1 %92  ;;  %v83_v42 = vpop.permute.xlu0 %82 }
  0x90   :  { %v98_v55 = vpop.permute.xlu0 %97  ;;  %v103_v56 = vpop.permute.xlu1 %102 }
  0x94   :  { %v108_v5 = vpop.permute.xlu0 %107  ;;  %v113_v10 = vpop.permute.xlu1 %112 }
  0xf5   :  { %v545_v43 = vpop.f32.mrb[0].mxu0  ;;  %v563_v44 = vpop.f32.mrb[0].mxu1 }
  0xf6   :  { %v546_v45 = vpop.f32.mrb[1].mxu0  ;;  %v564_v46 = vpop.f32.mrb[1].mxu1 }
  0xf7   :  { %v547_v47 = vadd.f32 %v546_v45, %v545_v43  ;;  %v548_v48 = vpop.f32.mrb[2].mxu0  ;;  %v565_v49 = vadd.f32 %v564_v46, %v563_v44  ;;  %v566_v50 = vpop.f32.mrb[2].mxu1 }
  0xf8   :  { %v549_v51 = vpop.f32.mrb[3].mxu0  ;;  %v567_v52 = vpop.f32.mrb[3].mxu1 }
  0xf9   :  { %v550_v53 = vadd.f32 %v549_v51, %v548_v48  ;;  %v568_v54 = vadd.f32 %v567_v52, %v566_v50  ;;  %v331_v59 = vadd.f32 %v547_v47, %v78_v40  ;;  %v355_v15 = vadd.f32 %v565_v49, %v108_v5 }
  0xfb   :  { %v334_v2 = vadd.f32 %v550_v53, %v83_v42  ;;  %v358_v21 = vadd.f32 %v568_v54, %v113_v10 }
  0xfd   :  { %v551_v57 = vpop.f32.mrb[4].mxu0  ;;  %v581_v58 = vpop.f32.mrb[4].mxu1 }
  0xfe   :  { %v552_v60 = vpop.f32.mrb[5].mxu0  ;;  %v395_v61 = vpop.f32.mrb[5].mxu1 }
  0xff   :  { %v553_v62 = vadd.f32 %v552_v60, %v551_v57  ;;  %v396_v63 = vadd.f32 %v395_v61, %v331_v59  ;;  %v554_v0 = vpop.f32.mrb[6].mxu0  ;;  %v582_v1 = vpop.f32.mrb[6].mxu1 }
 0x100   :  { %v555_v3 = vpop.f32.mrb[7].mxu0  ;;  %v398_v4 = vpop.f32.mrb[7].mxu1 }
 0x101   :  { %v339_v6 = vadd.f32 %v553_v62, %v88_v39  ;;  %v426_v7 = vmax.f32 %v396_v63, 0.0  ;;  %v556_v8 = vadd.f32 %v555_v3, %v554_v0  ;;  %v399_v9 = vadd.f32 %v398_v4, %v334_v2 }
 0x103   :  { %v404_v11 = vadd.f32 %v581_v58, %v339_v6  ;;  %v521_v12 = vpack.c.bf16 %v426_v7, %v426_v7  ;;  %v342_v13 = vadd.f32 %v556_v8, %v93_v41  ;;  %v427_v14 = vmax.f32 %v399_v9, 0.0 }
 0x105   :  { %v428_v16 = vmax.f32 %v404_v11, 0.0  ;;  %467 = vst.msk [vmem:[%s814_s3] sm:$0xf] %vm466_vm1, %v521_v12  ;;  %v407_v17 = vadd.f32 %v582_v1, %v342_v13  ;;  %v522_v18 = vpack.c.bf16 %v427_v14, %v427_v14  ;;  %v557_v19 = vpop.f32.mrb[8].mxu0  ;;  %v585_v20 = vpop.f32.mrb[8].mxu1 }
 0x106   :  { %v420_v22 = vadd.f32 %v585_v20, %v355_v15  ;;  %v558_v23 = vpop.f32.mrb[9].mxu0  ;;  %v411_v24 = vpop.f32.mrb[9].mxu1 }
 0x107   :  { %v523_v25 = vpack.c.bf16 %v428_v16, %v428_v16  ;;  %v429_v26 = vmax.f32 %v407_v17, 0.0  ;;  %468 = vst.msk [vmem:[%s814_s3 + $0x4] sm:$0xf] %vm466_vm1, %v522_v18  ;;  %v559_v27 = vadd.f32 %v558_v23, %v557_v19  ;;  %v560_v28 = vpop.f32.mrb[10].mxu0  ;;  %v586_v29 = vpop.f32.mrb[10].mxu1 }
 0x108   :  { %v432_v30 = vmax.f32 %v420_v22, 0.0  ;;  %v423_v31 = vadd.f32 %v586_v29, %v358_v21  ;;  %v561_v32 = vpop.f32.mrb[11].mxu0  ;;  %v414_v33 = vpop.f32.mrb[11].mxu1 }
 0x109   :  { %469 = vst.msk [vmem:[%s814_s3 + $0x8] sm:$0xf] %vm466_vm1, %v523_v25  ;;  %v524_v34 = vpack.c.bf16 %v429_v26, %v429_v26  ;;  %v347_v35 = vadd.f32 %v559_v27, %v98_v55  ;;  %v562_v36 = vadd.f32 %v561_v32, %v560_v28 }
 0x10a   :  { %v527_v37 = vpack.c.bf16 %v432_v30, %v432_v30  ;;  %v433_v38 = vmax.f32 %v423_v31, 0.0 }
 0x10b   :  { %470 = vst.msk [vmem:[%s814_s3 + $0xc] sm:$0xf] %vm466_vm1, %v524_v34  ;;  %v412_v39 = vadd.f32 %v411_v24, %v347_v35  ;;  %v350_v40 = vadd.f32 %v562_v36, %v103_v56 }
 0x10c   :  { %473 = vst.msk [vmem:[%s814_s3 + $0x18] sm:$0xf] %vm466_vm1, %v527_v37  ;;  %v528_v41 = vpack.c.bf16 %v433_v38, %v433_v38 }
 0x10d   :  { %v430_v42 = vmax.f32 %v412_v39, 0.0  ;;  %v415_v43 = vadd.f32 %v414_v33, %v350_v40 }
 0x10e   :  { %474 = vst.msk [vmem:[%s814_s3 + $0x1c] sm:$0xf] %vm466_vm1, %v528_v41 }
 0x10f   :  { %v525_v44 = vpack.c.bf16 %v430_v42, %v430_v42  ;;  %v431_v45 = vmax.f32 %v415_v43, 0.0 }
 0x111   :  { %471 = vst.msk [vmem:[%s814_s3 + $0x10] sm:$0xf] %vm466_vm1, %v525_v44  ;;  %v526_v46 = vpack.c.bf16 %v431_v45, %v431_v45 }
 0x113   :  { %472 = vst.msk [vmem:[%s814_s3 + $0x14] sm:$0xf] %vm466_vm1, %v526_v46 }

// kernel: forward.7
= control target key start
LH: loop header
LB: loop body
LE: loop exit
PB: predicated region body
PF: predicated region fallthrough
CT: control target
= control target key end

     0   :  { %v420_v36 = vlaneseq  ;;  %v4428_v37 = vmov 1966171168   ;;  %s5823_s0 = inlined_call_operand.vmem [shape: bf16[2,3136], index: 0, kind: input, shape index: {}]   ;;  %s5824_s1 = inlined_call_operand.vmem [shape: bf16[3136,256], index: 1, kind: input, shape index: {}]   ;;  %s5825_s2 = inlined_call_operand.vmem [shape: f32[1,256], index: 2, kind: input, shape index: {}]   ;;  %s5826_s3 = inlined_call_operand.vmem [shape: bf16[256,4], index: 3, kind: input, shape index: {}]   ;;  %s5827_s4 = inlined_call_operand.vmem [shape: f32[1,4], index: 4, kind: input, shape index: {}]   ;;  %s5828_s5 = inlined_call_operand.hbm [shape: f32[2,4], index: 5, kind: output, shape index: {}]  }
   0x1   :  { %v3795_v0 = vld [vmem:[%s5824_s1 + $0x4] ss:$8 sps:$4 sm:$0xff]   ;;  %v3799_v2 = vld [vmem:[%s5824_s1] ss:$8 sps:$4 sm:$0xff]   ;;  %v3801_v4 = vld [vmem:[%s5824_s1 + $0x14] ss:$8 sps:$4 sm:$0xff]   ;;  %v436_v38 = vunpack.c.l.s4 %v4428_v37 }
   0x2   :  { %v3797_v1 = vld [vmem:[%s5824_s1 + $0x604] ss:$8 sps:$4 sm:$0xff]   ;;  %2583 = vmatprep.subr.bf16.mxu1 %v3795_v0  ;;  %v3800_v3 = vld [vmem:[%s5824_s1 + $0x600] ss:$8 sps:$4 sm:$0xff]   ;;  %v3803_v5 = vld [vmem:[%s5824_s1 + $0x614] ss:$8 sps:$4 sm:$0xff]  }
   0x3   :  { %2829 = vmatprep.subr.bf16.mxu0 %v3797_v1  ;;  %2584 = vmatpush1.bf16.msra.mxu1 %v3799_v2  ;;  %v3805_v6 = vld [vmem:[%s5824_s1 + $0x10] ss:$8 sps:$4 sm:$0xff]   ;;  %v3807_v8 = vld [vmem:[%s5824_s1 + $0x24] ss:$8 sps:$4 sm:$0xff]   ;;  %v3811_v10 = vld [vmem:[%s5824_s1 + $0x20] ss:$8 sps:$4 sm:$0xff]   ;;  %v437_v43 = vunpack.c.0.s8 %v436_v38 }
   0x4   :  { %2830 = vmatpush1.bf16.msra.mxu0 %v3800_v3  ;;  %2585 = vmatprep.subr.bf16.mxu1 %v3801_v4  ;;  %v3806_v7 = vld [vmem:[%s5824_s1 + $0x610] ss:$8 sps:$4 sm:$0xff]   ;;  %v3809_v9 = vld [vmem:[%s5824_s1 + $0x624] ss:$8 sps:$4 sm:$0xff]   ;;  %v3812_v11 = vld [vmem:[%s5824_s1 + $0x620] ss:$8 sps:$4 sm:$0xff]  }
   0x5   :  { %2831 = vmatprep.subr.bf16.mxu0 %v3803_v5  ;;  %v3813_v12 = vld [vmem:[%s5824_s1 + $0x34] ss:$8 sps:$4 sm:$0xff]   ;;  %v3817_v14 = vld [vmem:[%s5824_s1 + $0x30] ss:$8 sps:$4 sm:$0xff]   ;;  %v3819_v16 = vld [vmem:[%s5824_s1 + $0x44] ss:$8 sps:$4 sm:$0xff]  }
   0x6   :  { %v3815_v13 = vld [vmem:[%s5824_s1 + $0x634] ss:$8 sps:$4 sm:$0xff]   ;;  %v3818_v15 = vld [vmem:[%s5824_s1 + $0x630] ss:$8 sps:$4 sm:$0xff]   ;;  %v3821_v17 = vld [vmem:[%s5824_s1 + $0x644] ss:$8 sps:$4 sm:$0xff]  }
   0x7   :  { %2586 = vmatpush1.bf16.msra.mxu1 %v3805_v6  ;;  %v3823_v18 = vld [vmem:[%s5824_s1 + $0x40] ss:$8 sps:$4 sm:$0xff]   ;;  %v3825_v20 = vld [vmem:[%s5824_s1 + $0x54] ss:$8 sps:$4 sm:$0xff]   ;;  %v3829_v22 = vld [vmem:[%s5824_s1 + $0x50] ss:$8 sps:$4 sm:$0xff]  }
   0x8   :  { %2832 = vmatpush1.bf16.msra.mxu0 %v3806_v7  ;;  %2587 = vmatprep.subr.bf16.mxu1 %v3807_v8  ;;  %v3824_v19 = vld [vmem:[%s5824_s1 + $0x640] ss:$8 sps:$4 sm:$0xff]   ;;  %v3827_v21 = vld [vmem:[%s5824_s1 + $0x654] ss:$8 sps:$4 sm:$0xff]   ;;  %v3830_v23 = vld [vmem:[%s5824_s1 + $0x650] ss:$8 sps:$4 sm:$0xff]  }
   0x9   :  { %2833 = vmatprep.subr.bf16.mxu0 %v3809_v9  ;;  %v3831_v24 = vld [vmem:[%s5824_s1 + $0x64] ss:$8 sps:$4 sm:$0xff]   ;;  %v3835_v26 = vld [vmem:[%s5824_s1 + $0x60] ss:$8 sps:$4 sm:$0xff]   ;;  %v3837_v28 = vld [vmem:[%s5824_s1 + $0x74] ss:$8 sps:$4 sm:$0xff]  }
   0xa   :  { %v3833_v25 = vld [vmem:[%s5824_s1 + $0x664] ss:$8 sps:$4 sm:$0xff]   ;;  %v3836_v27 = vld [vmem:[%s5824_s1 + $0x660] ss:$8 sps:$4 sm:$0xff]   ;;  %v3839_v29 = vld [vmem:[%s5824_s1 + $0x674] ss:$8 sps:$4 sm:$0xff]  }
   0xb   :  { %2588 = vmatpush1.bf16.msra.mxu1 %v3811_v10  ;;  %v3841_v30 = vld [vmem:[%s5824_s1 + $0x70] ss:$8 sps:$4 sm:$0xff]   ;;  %v3843_v32 = vld [vmem:[%s5824_s1 + $0x84] ss:$8 sps:$4 sm:$0xff]   ;;  %v3847_v34 = vld [vmem:[%s5824_s1 + $0x80] ss:$8 sps:$4 sm:$0xff]  }
   0xc   :  { %2834 = vmatpush1.bf16.msra.mxu0 %v3812_v11  ;;  %2589 = vmatprep.subr.bf16.mxu1 %v3813_v12  ;;  %v3842_v31 = vld [vmem:[%s5824_s1 + $0x670] ss:$8 sps:$4 sm:$0xff]   ;;  %v3845_v33 = vld [vmem:[%s5824_s1 + $0x684] ss:$8 sps:$4 sm:$0xff]   ;;  %v3848_v35 = vld [vmem:[%s5824_s1 + $0x680] ss:$8 sps:$4 sm:$0xff]  }
   0xd   :  { %2835 = vmatprep.subr.bf16.mxu0 %v3815_v13  ;;  %v3849_v39 = vld [vmem:[%s5824_s1 + $0x94] ss:$8 sps:$4 sm:$0xff]   ;;  %v3853_v41 = vld [vmem:[%s5824_s1 + $0x90] ss:$8 sps:$4 sm:$0xff]   ;;  %v4578_v42 = vshrl.u32 %v420_v36, 7  ;;  %v4607_v52 = vld [vmem:[%s5823_s0] sm:$0xff] }
   0xe   :  { %v3851_v40 = vld [vmem:[%s5824_s1 + $0x694] ss:$8 sps:$4 sm:$0xff]   ;;  %v3854_v44 = vld [vmem:[%s5824_s1 + $0x690] ss:$8 sps:$4 sm:$0xff]   ;;  %v3855_v45 = vld [vmem:[%s5824_s1 + $0xa4] ss:$8 sps:$4 sm:$0xff]  }
   0xf   :  { %2590 = vmatpush1.bf16.msra.mxu1 %v3817_v14  ;;  %v3857_v46 = vld [vmem:[%s5824_s1 + $0x6a4] ss:$8 sps:$4 sm:$0xff]   ;;  %v3859_v47 = vld [vmem:[%s5824_s1 + $0xa0] ss:$8 sps:$4 sm:$0xff]   ;;  %v4596_v49 = vsub.s32 %v437_v43, %v4578_v42  ;;  %v3861_v50 = vld [vmem:[%s5824_s1 + $0xb4] ss:$8 sps:$4 sm:$0xff]  }
  0x10   :  { %2836 = vmatpush1.bf16.msra.mxu0 %v3818_v15  ;;  %2591 = vmatprep.subr.bf16.mxu1 %v3819_v16  ;;  %v3860_v48 = vld [vmem:[%s5824_s1 + $0x6a0] ss:$8 sps:$4 sm:$0xff]   ;;  %v3863_v51 = vld [vmem:[%s5824_s1 + $0x6b4] ss:$8 sps:$4 sm:$0xff]   ;;  %v3865_v53 = vld [vmem:[%s5824_s1 + $0xb0] ss:$8 sps:$4 sm:$0xff]  }
  0x11   :  { %2837 = vmatprep.subr.bf16.mxu0 %v3821_v17  ;;  %v441_v54 = vrot.slane %v4607_v52, %v4596_v49  ;;  %v3866_v55 = vld [vmem:[%s5824_s1 + $0x6b0] ss:$8 sps:$4 sm:$0xff]   ;;  %v23_v56 = vld [vmem:[%s5823_s0 + $0x8] sm:$0xff]  ;;  %v3873_v1 = vld [vmem:[%s5824_s1 + $0xd4] ss:$8 sps:$4 sm:$0xff]  }
  0x12   :  { %v3867_v57 = vld [vmem:[%s5824_s1 + $0xc4] ss:$8 sps:$4 sm:$0xff]   ;;  %v483_v60 = vcombine.high %v23_v56, %v23_v56  ;;  %v3871_v63 = vld [vmem:[%s5824_s1 + $0xc0] ss:$8 sps:$4 sm:$0xff]   ;;  %v3875_v2 = vld [vmem:[%s5824_s1 + $0x6d4] ss:$8 sps:$4 sm:$0xff]  }
  0x13   :  { %2592 = vmatpush1.bf16.msra.mxu1 %v3823_v18  ;;  %v3869_v58 = vld [vmem:[%s5824_s1 + $0x6c4] ss:$8 sps:$4 sm:$0xff]   ;;  %v449_v59 = vcombine.high %v441_v54, %v441_v54  ;;  %v3872_v0 = vld [vmem:[%s5824_s1 + $0x6c0] ss:$8 sps:$4 sm:$0xff]   ;;  %v3877_v5 = vld [vmem:[%s5824_s1 + $0xd0] ss:$8 sps:$4 sm:$0xff]   ;;  %v4678_v17 = vrot.slane %v441_v54, %v4596_v49 }
  0x14   :  { %2838 = vmatpush1.bf16.msra.mxu0 %v3824_v19  ;;  %2593 = vmatprep.subr.bf16.mxu1 %v3825_v20  ;;  %v497_v62 = vrot.slane %v483_v60, %v4596_v49  ;;  %v3878_v6 = vld [vmem:[%s5824_s1 + $0x6d0] ss:$8 sps:$4 sm:$0xff]   ;;  %v3879_v7 = vld [vmem:[%s5824_s1 + $0xe4] ss:$8 sps:$4 sm:$0xff]   ;;  %v3883_v9 = vld [vmem:[%s5824_s1 + $0xe0] ss:$8 sps:$4 sm:$0xff]  }
  0x15   :  { %2839 = vmatprep.subr.bf16.mxu0 %v3827_v21  ;;  %v471_v61 = vrot.slane %v449_v59, %v4596_v49  ;;  %v3881_v8 = vld [vmem:[%s5824_s1 + $0x6e4] ss:$8 sps:$4 sm:$0xff]   ;;  %v3884_v10 = vld [vmem:[%s5824_s1 + $0x6e0] ss:$8 sps:$4 sm:$0xff]   ;;  %v3885_v11 = vld [vmem:[%s5824_s1 + $0xf4] ss:$8 sps:$4 sm:$0xff]  }
  0x16   :  { %v499_v3 = vcombine.high %v497_v62, %v497_v62  ;;  %v3887_v12 = vld [vmem:[%s5824_s1 + $0x6f4] ss:$8 sps:$4 sm:$0xff]   ;;  %v3889_v13 = vld [vmem:[%s5824_s1 + $0xf0] ss:$8 sps:$4 sm:$0xff]   ;;  %v3894_v15 = vld [vmem:[%s5824_s1 + $0x104] ss:$8 sps:$4 sm:$0xff]   ;;  %v4681_v18 = vrot.slane %v497_v62, %v4596_v49 }
  0x17   :  { %2594 = vmatpush1.bf16.msra.mxu1 %v3829_v22  ;;  %2615 = vmatprep.mubr.bf16.mxu1 %v471_v61  ;;  %v3890_v14 = vld [vmem:[%s5824_s1 + $0x6f0] ss:$8 sps:$4 sm:$0xff]   ;;  %v3898_v16 = vld [vmem:[%s5824_s1 + $0x704] ss:$8 sps:$4 sm:$0xff]   ;;  %v3892_v19 = vld [vmem:[%s5824_s1 + $0x100] ss:$8 sps:$4 sm:$0xff]  }
  0x18   :  { %2840 = vmatpush1.bf16.msra.mxu0 %v3830_v23  ;;  %2595 = vmatprep.subr.bf16.mxu1 %v3831_v24  ;;  %v527_v4 = vrot.slane %v499_v3, %v4596_v49  ;;  %v3896_v20 = vld [vmem:[%s5824_s1 + $0x700] ss:$8 sps:$4 sm:$0xff]   ;;  %v3901_v21 = vld [vmem:[%s5824_s1 + $0x114] ss:$8 sps:$4 sm:$0xff]   ;;  %v481_v23 = vcombine.high %v471_v61, %v471_v61  ;;  %v3922_v36 = vld [vmem:[%s5824_s1 + $0x744] ss:$8 sps:$4 sm:$0xff]  }
  0x19   :  { %2841 = vmatprep.subr.bf16.mxu0 %v3833_v25  ;;  %v3904_v22 = vld [vmem:[%s5824_s1 + $0x714] ss:$8 sps:$4 sm:$0xff]   ;;  %v3899_v25 = vld [vmem:[%s5824_s1 + $0x110] ss:$8 sps:$4 sm:$0xff]   ;;  %v3917_v37 = vld [vmem:[%s5824_s1 + $0x140] ss:$8 sps:$4 sm:$0xff]  }
  0x1a   :  { %2861 = vmatprep.mubr.bf16.mxu0 %v527_v4  ;;  %v531_v24 = vcombine.high %v527_v4, %v527_v4  ;;  %v3920_v38 = vld [vmem:[%s5824_s1 + $0x740] ss:$8 sps:$4 sm:$0xff]   ;;  %v3926_v43 = vld [vmem:[%s5824_s1 + $0x750] ss:$8 sps:$4 sm:$0xff]   ;;  %v3943_v54 = vld [vmem:[%s5824_s1 + $0x184] ss:$8 sps:$4 sm:$0xff]  }
  0x1b   :  { %2596 = vmatpush1.bf16.msra.mxu1 %v3835_v26  ;;  %v3902_v26 = vld [vmem:[%s5824_s1 + $0x710] ss:$8 sps:$4 sm:$0xff]   ;;  %v3941_v56 = vld [vmem:[%s5824_s1 + $0x180] ss:$8 sps:$4 sm:$0xff]   ;;  %v3952_v59 = vld [vmem:[%s5824_s1 + $0x794] ss:$8 sps:$4 sm:$0xff]  }
  0x1c   :  { %2842 = vmatpush1.bf16.msra.mxu0 %v3836_v27  ;;  %2597 = vmatprep.subr.bf16.mxu1 %v3837_v28  ;;  %v3907_v27 = vld [vmem:[%s5824_s1 + $0x124] ss:$8 sps:$4 sm:$0xff]   ;;  %v3947_v60 = vld [vmem:[%s5824_s1 + $0x190] ss:$8 sps:$4 sm:$0xff]   ;;  %v3964_v3 = vld [vmem:[%s5824_s1 + $0x7b4] ss:$8 sps:$4 sm:$0xff]  }
  0x1d   :  { %2843 = vmatprep.subr.bf16.mxu0 %v3839_v29  ;;  %v3910_v28 = vld [vmem:[%s5824_s1 + $0x724] ss:$8 sps:$4 sm:$0xff]   ;;  %v3905_v29 = vld [vmem:[%s5824_s1 + $0x120] ss:$8 sps:$4 sm:$0xff]   ;;  %v3950_v61 = vld [vmem:[%s5824_s1 + $0x790] ss:$8 sps:$4 sm:$0xff]  }
  0x1e   :  { %v3955_v62 = vld [vmem:[%s5824_s1 + $0x1a4] ss:$8 sps:$4 sm:$0xff]   ;;  %v3959_v4 = vld [vmem:[%s5824_s1 + $0x1b0] ss:$8 sps:$4 sm:$0xff]  }
  0x1f   :  { %2598 = vmatpush1.bf16.msra.mxu1 %v3841_v30  ;;  %v3908_v30 = vld [vmem:[%s5824_s1 + $0x720] ss:$8 sps:$4 sm:$0xff]  }
  0x20   :  { %2844 = vmatpush1.bf16.msra.mxu0 %v3842_v31  ;;  %2599 = vmatprep.subr.bf16.mxu1 %v3843_v32  ;;  %v3913_v31 = vld [vmem:[%s5824_s1 + $0x134] ss:$8 sps:$4 sm:$0xff]  }
  0x21   :  { %2845 = vmatprep.subr.bf16.mxu0 %v3845_v33  ;;  %v3916_v32 = vld [vmem:[%s5824_s1 + $0x734] ss:$8 sps:$4 sm:$0xff]   ;;  %v3911_v33 = vld [vmem:[%s5824_s1 + $0x130] ss:$8 sps:$4 sm:$0xff]  }
  0x23   :  { %2600 = vmatpush1.bf16.msra.mxu1 %v3847_v34  ;;  %v3914_v34 = vld [vmem:[%s5824_s1 + $0x730] ss:$8 sps:$4 sm:$0xff]  }
  0x24   :  { %2846 = vmatpush1.bf16.msra.mxu0 %v3848_v35  ;;  %2601 = vmatprep.subr.bf16.mxu1 %v3849_v39  ;;  %v3919_v35 = vld [vmem:[%s5824_s1 + $0x144] ss:$8 sps:$4 sm:$0xff]   ;;  %v3925_v39 = vld [vmem:[%s5824_s1 + $0x154] ss:$8 sps:$4 sm:$0xff]  }
  0x25   :  { %2847 = vmatprep.subr.bf16.mxu0 %v3851_v40  ;;  %v3928_v40 = vld [vmem:[%s5824_s1 + $0x754] ss:$8 sps:$4 sm:$0xff]  }
  0x27   :  { %2602 = vmatpush1.bf16.msra.mxu1 %v3853_v41  ;;  %v3923_v41 = vld [vmem:[%s5824_s1 + $0x150] ss:$8 sps:$4 sm:$0xff]  }
  0x28   :  { %2848 = vmatpush1.bf16.msra.mxu0 %v3854_v44  ;;  %2603 = vmatprep.subr.bf16.mxu1 %v3855_v45  ;;  %v3931_v44 = vld [vmem:[%s5824_s1 + $0x164] ss:$8 sps:$4 sm:$0xff]  }
  0x29   :  { %2849 = vmatprep.subr.bf16.mxu0 %v3857_v46  ;;  %v3934_v45 = vld [vmem:[%s5824_s1 + $0x764] ss:$8 sps:$4 sm:$0xff]   ;;  %v3929_v46 = vld [vmem:[%s5824_s1 + $0x160] ss:$8 sps:$4 sm:$0xff]  }
  0x2b   :  { %2604 = vmatpush1.bf16.msra.mxu1 %v3859_v47  ;;  %v3932_v47 = vld [vmem:[%s5824_s1 + $0x760] ss:$8 sps:$4 sm:$0xff]  }
  0x2c   :  { %2850 = vmatpush1.bf16.msra.mxu0 %v3860_v48  ;;  %2605 = vmatprep.subr.bf16.mxu1 %v3861_v50  ;;  %v3937_v48 = vld [vmem:[%s5824_s1 + $0x174] ss:$8 sps:$4 sm:$0xff]  }
  0x2d   :  { %2851 = vmatprep.subr.bf16.mxu0 %v3863_v51  ;;  %v3940_v50 = vld [vmem:[%s5824_s1 + $0x774] ss:$8 sps:$4 sm:$0xff]   ;;  %v3935_v51 = vld [vmem:[%s5824_s1 + $0x170] ss:$8 sps:$4 sm:$0xff]  }
  0x2f   :  { %2606 = vmatpush1.bf16.msra.mxu1 %v3865_v53  ;;  %v3938_v53 = vld [vmem:[%s5824_s1 + $0x770] ss:$8 sps:$4 sm:$0xff]  }
  0x30   :  { %2852 = vmatpush1.bf16.msra.mxu0 %v3866_v55  ;;  %2607 = vmatprep.subr.bf16.mxu1 %v3867_v57  ;;  %v3946_v55 = vld [vmem:[%s5824_s1 + $0x784] ss:$8 sps:$4 sm:$0xff]   ;;  %v3944_v57 = vld [vmem:[%s5824_s1 + $0x780] ss:$8 sps:$4 sm:$0xff]  }
  0x31   :  { %2853 = vmatprep.subr.bf16.mxu0 %v3869_v58  ;;  %v3949_v58 = vld [vmem:[%s5824_s1 + $0x194] ss:$8 sps:$4 sm:$0xff]  }
  0x33   :  { %2608 = vmatpush1.bf16.msra.mxu1 %v3871_v63  ;;  %v3958_v63 = vld [vmem:[%s5824_s1 + $0x7a4] ss:$8 sps:$4 sm:$0xff]  }
  0x34   :  { %2854 = vmatpush1.bf16.msra.mxu0 %v3872_v0  ;;  %2609 = vmatprep.subr.bf16.mxu1 %v3873_v1  ;;  %v3953_v0 = vld [vmem:[%s5824_s1 + $0x1a0] ss:$8 sps:$4 sm:$0xff]  }
  0x35   :  { %2855 = vmatprep.subr.bf16.mxu0 %v3875_v2  ;;  %v3956_v1 = vld [vmem:[%s5824_s1 + $0x7a0] ss:$8 sps:$4 sm:$0xff]   ;;  %v3961_v2 = vld [vmem:[%s5824_s1 + $0x1b4] ss:$8 sps:$4 sm:$0xff]  }
  0x37   :  { %2610 = vmatpush1.bf16.msra.mxu1 %v3877_v5  ;;  %v3962_v5 = vld [vmem:[%s5824_s1 + $0x7b0] ss:$8 sps:$4 sm:$0xff]  }
  0x38   :  { %2856 = vmatpush1.bf16.msra.mxu0 %v3878_v6  ;;  %2611 = vmatprep.subr.bf16.mxu1 %v3879_v7  ;;  %v3967_v6 = vld [vmem:[%s5824_s1 + $0x1c4] ss:$8 sps:$4 sm:$0xff]  }
  0x39   :  { %2857 = vmatprep.subr.bf16.mxu0 %v3881_v8  ;;  %v3970_v7 = vld [vmem:[%s5824_s1 + $0x7c4] ss:$8 sps:$4 sm:$0xff]   ;;  %v3965_v8 = vld [vmem:[%s5824_s1 + $0x1c0] ss:$8 sps:$4 sm:$0xff]  }
  0x3b   :  { %2612 = vmatpush1.bf16.msra.mxu1 %v3883_v9  ;;  %v3968_v9 = vld [vmem:[%s5824_s1 + $0x7c0] ss:$8 sps:$4 sm:$0xff]  }
  0x3c   :  { %2858 = vmatpush1.bf16.msra.mxu0 %v3884_v10  ;;  %2613 = vmatprep.subr.bf16.mxu1 %v3885_v11  ;;  %v3973_v10 = vld [vmem:[%s5824_s1 + $0x1d4] ss:$8 sps:$4 sm:$0xff]  }
  0x3d   :  { %2859 = vmatprep.subr.bf16.mxu0 %v3887_v12  ;;  %v3976_v11 = vld [vmem:[%s5824_s1 + $0x7d4] ss:$8 sps:$4 sm:$0xff]   ;;  %v3971_v12 = vld [vmem:[%s5824_s1 + $0x1d0] ss:$8 sps:$4 sm:$0xff]  }
  0x3f   :  { %2614 = vmatpush1.bf16.msra.mxu1 %v3889_v13  ;;  %v3974_v13 = vld [vmem:[%s5824_s1 + $0x7d0] ss:$8 sps:$4 sm:$0xff]  }
  0x40   :  { %2860 = vmatpush1.bf16.msra.mxu0 %v3890_v14  ;;  %2624 = vmatprep.subr.bf16.mxu1 %v3894_v15  ;;  %v3979_v14 = vld [vmem:[%s5824_s1 + $0x1e4] ss:$8 sps:$4 sm:$0xff]  }
  0x41   :  { %2870 = vmatprep.subr.bf16.mxu0 %v3898_v16  ;;  %v3982_v15 = vld [vmem:[%s5824_s1 + $0x7e4] ss:$8 sps:$4 sm:$0xff]   ;;  %v434_v16 = vcombine.high %v4607_v52, %v4607_v52  ;;  %v3988_v52 = vld [vmem:[%s5824_s1 + $0x7f4] ss:$8 sps:$4 sm:$0xff]  }
  0x42   :  { %2616 = vmatmul.mubr.bf16.vlgmr.msra.gmra.mrb[0].mxu1 %v4678_v17 }
  0x43   :  { %2862 = vmatmul.mubr.bf16.vlgmr.msra.gmra.mrb[0].mxu0 %v4681_v18  ;;  %2625 = vmatpush1.bf16.msra.mxu1 %v3892_v19  ;;  %v3977_v19 = vld [vmem:[%s5824_s1 + $0x1e0] ss:$8 sps:$4 sm:$0xff]  }
  0x44   :  { %2871 = vmatpush1.bf16.msra.mxu0 %v3896_v20  ;;  %2626 = vmatprep.subr.bf16.mxu1 %v3901_v21  ;;  %v3980_v20 = vld [vmem:[%s5824_s1 + $0x7e0] ss:$8 sps:$4 sm:$0xff]   ;;  %v3985_v21 = vld [vmem:[%s5824_s1 + $0x1f4] ss:$8 sps:$4 sm:$0xff]  }
  0x45   :  { %2872 = vmatprep.subr.bf16.mxu0 %v3904_v22  ;;  %2656 = vmatprep.mubr.bf16.mxu1 %v481_v23  ;;  %v4868_v22 = vrot.slane %v434_v16, %v4596_v49  ;;  %v3983_v23 = vld [vmem:[%s5824_s1 + $0x1f0] ss:$8 sps:$4 sm:$0xff]  }
  0x46   :  { %2902 = vmatprep.mubr.bf16.mxu0 %v531_v24  ;;  %v3986_v24 = vld [vmem:[%s5824_s1 + $0x7f0] ss:$8 sps:$4 sm:$0xff]  }
  0x47   :  { %2627 = vmatpush1.bf16.msra.mxu1 %v3899_v25  ;;  %v3991_v25 = vld [vmem:[%s5824_s1 + $0x204] ss:$8 sps:$4 sm:$0xff]   ;;  %v4055_v16 = vld [vmem:[%s5824_s1 + $0x2b0] ss:$8 sps:$4 sm:$0xff]  }
  0x48   :  { %2873 = vmatpush1.bf16.msra.mxu0 %v3902_v26  ;;  %2628 = vmatprep.subr.bf16.mxu1 %v3907_v27  ;;  %v3994_v26 = vld [vmem:[%s5824_s1 + $0x804] ss:$8 sps:$4 sm:$0xff]   ;;  %v450_v27 = vcombine.high %v4868_v22, %v4868_v22 }
  0x49   :  { %2874 = vmatprep.subr.bf16.mxu0 %v3910_v28  ;;  %v479_v28 = vcombine.high %v4678_v17, %v4678_v17  ;;  %v4000_v17 = vld [vmem:[%s5824_s1 + $0x814] ss:$8 sps:$4 sm:$0xff]  }
  0x4b   :  { %2629 = vmatpush1.bf16.msra.mxu1 %v3905_v29  ;;  %v529_v29 = vcombine.high %v4681_v18, %v4681_v18  ;;  %v4901_v18 = vrot.slane %v450_v27, %v4596_v49  ;;  %v4070_v27 = vld [vmem:[%s5824_s1 + $0x8d0] ss:$8 sps:$4 sm:$0xff]  }
  0x4c   :  { %2875 = vmatpush1.bf16.msra.mxu0 %v3908_v30  ;;  %2630 = vmatprep.subr.bf16.mxu1 %v3913_v31  ;;  %v3989_v30 = vld [vmem:[%s5824_s1 + $0x200] ss:$8 sps:$4 sm:$0xff]  }
  0x4d   :  { %2876 = vmatprep.subr.bf16.mxu0 %v3916_v32  ;;  %v3992_v31 = vld [vmem:[%s5824_s1 + $0x800] ss:$8 sps:$4 sm:$0xff]   ;;  %v3997_v32 = vld [vmem:[%s5824_s1 + $0x214] ss:$8 sps:$4 sm:$0xff]  }
  0x4f   :  { %2631 = vmatpush1.bf16.msra.mxu1 %v3911_v33  ;;  %v4906_v33 = vld [vmem:[%s5823_s0 + $0x10] sm:$0xff] }
  0x50   :  { %2877 = vmatpush1.bf16.msra.mxu0 %v3914_v34  ;;  %2632 = vmatprep.subr.bf16.mxu1 %v3919_v35  ;;  %v3995_v34 = vld [vmem:[%s5824_s1 + $0x210] ss:$8 sps:$4 sm:$0xff]   ;;  %v4913_v35 = vrot.slane %v4906_v33, %v4596_v49 }
  0x51   :  { %2878 = vmatprep.subr.bf16.mxu0 %v3922_v36  ;;  %v3998_v36 = vld [vmem:[%s5824_s1 + $0x810] ss:$8 sps:$4 sm:$0xff]  }
  0x53   :  { %2633 = vmatpush1.bf16.msra.mxu1 %v3917_v37  ;;  %v4003_v37 = vld [vmem:[%s5824_s1 + $0x224] ss:$8 sps:$4 sm:$0xff]  }
  0x54   :  { %2879 = vmatpush1.bf16.msra.mxu0 %v3920_v38  ;;  %2634 = vmatprep.subr.bf16.mxu1 %v3925_v39  ;;  %v4006_v38 = vld [vmem:[%s5824_s1 + $0x824] ss:$8 sps:$4 sm:$0xff]   ;;  %v547_v39 = vcombine.high %v4913_v35, %v4913_v35 }
  0x55   :  { %2880 = vmatprep.subr.bf16.mxu0 %v3928_v40  ;;  %v4001_v40 = vld [vmem:[%s5824_s1 + $0x220] ss:$8 sps:$4 sm:$0xff]  }
  0x57   :  { %2635 = vmatpush1.bf16.msra.mxu1 %v3923_v41  ;;  %v4931_v41 = vrot.slane %v547_v39, %v4596_v49  ;;  %v4085_v39 = vld [vmem:[%s5824_s1 + $0x300] ss:$8 sps:$4 sm:$0xff]  }
  0x58   :  { %2881 = vmatpush1.bf16.msra.mxu0 %v3926_v43  ;;  %2636 = vmatprep.subr.bf16.mxu1 %v3931_v44  ;;  %v4004_v43 = vld [vmem:[%s5824_s1 + $0x820] ss:$8 sps:$4 sm:$0xff]   ;;  %v4009_v44 = vld [vmem:[%s5824_s1 + $0x234] ss:$8 sps:$4 sm:$0xff]  }
  0x59   :  { %2882 = vmatprep.subr.bf16.mxu0 %v3934_v45  ;;  %v4012_v45 = vld [vmem:[%s5824_s1 + $0x834] ss:$8 sps:$4 sm:$0xff]  }
  0x5b   :  { %2637 = vmatpush1.bf16.msra.mxu1 %v3929_v46  ;;  %v4007_v46 = vld [vmem:[%s5824_s1 + $0x230] ss:$8 sps:$4 sm:$0xff]  }
  0x5c   :  { %2883 = vmatpush1.bf16.msra.mxu0 %v3932_v47  ;;  %2638 = vmatprep.subr.bf16.mxu1 %v3937_v48  ;;  %v4010_v47 = vld [vmem:[%s5824_s1 + $0x830] ss:$8 sps:$4 sm:$0xff]   ;;  %v4015_v48 = vld [vmem:[%s5824_s1 + $0x244] ss:$8 sps:$4 sm:$0xff]  }
  0x5d   :  { %2884 = vmatprep.subr.bf16.mxu0 %v3940_v50  ;;  %v4018_v50 = vld [vmem:[%s5824_s1 + $0x844] ss:$8 sps:$4 sm:$0xff]  }
  0x5f   :  { %2639 = vmatpush1.bf16.msra.mxu1 %v3935_v51  ;;  %v4013_v51 = vld [vmem:[%s5824_s1 + $0x240] ss:$8 sps:$4 sm:$0xff]  }
  0x60   :  { %2885 = vmatpush1.bf16.msra.mxu0 %v3938_v53  ;;  %2640 = vmatprep.subr.bf16.mxu1 %v3943_v54  ;;  %v4016_v53 = vld [vmem:[%s5824_s1 + $0x840] ss:$8 sps:$4 sm:$0xff]   ;;  %v4021_v54 = vld [vmem:[%s5824_s1 + $0x254] ss:$8 sps:$4 sm:$0xff]  }
  0x61   :  { %2886 = vmatprep.subr.bf16.mxu0 %v3946_v55  ;;  %v4024_v55 = vld [vmem:[%s5824_s1 + $0x854] ss:$8 sps:$4 sm:$0xff]  }
  0x63   :  { %2641 = vmatpush1.bf16.msra.mxu1 %v3941_v56  ;;  %v4019_v56 = vld [vmem:[%s5824_s1 + $0x250] ss:$8 sps:$4 sm:$0xff]  }
  0x64   :  { %2887 = vmatpush1.bf16.msra.mxu0 %v3944_v57  ;;  %2642 = vmatprep.subr.bf16.mxu1 %v3949_v58  ;;  %v4022_v57 = vld [vmem:[%s5824_s1 + $0x850] ss:$8 sps:$4 sm:$0xff]   ;;  %v4027_v58 = vld [vmem:[%s5824_s1 + $0x264] ss:$8 sps:$4 sm:$0xff]  }
  0x65   :  { %2888 = vmatprep.subr.bf16.mxu0 %v3952_v59  ;;  %v4030_v59 = vld [vmem:[%s5824_s1 + $0x864] ss:$8 sps:$4 sm:$0xff]  }
  0x67   :  { %2643 = vmatpush1.bf16.msra.mxu1 %v3947_v60  ;;  %v4025_v60 = vld [vmem:[%s5824_s1 + $0x260] ss:$8 sps:$4 sm:$0xff]  }
  0x68   :  { %2889 = vmatpush1.bf16.msra.mxu0 %v3950_v61  ;;  %2644 = vmatprep.subr.bf16.mxu1 %v3955_v62  ;;  %v4028_v61 = vld [vmem:[%s5824_s1 + $0x860] ss:$8 sps:$4 sm:$0xff]   ;;  %v4033_v62 = vld [vmem:[%s5824_s1 + $0x274] ss:$8 sps:$4 sm:$0xff]  }
  0x69   :  { %2890 = vmatprep.subr.bf16.mxu0 %v3958_v63  ;;  %v4036_v63 = vld [vmem:[%s5824_s1 + $0x874] ss:$8 sps:$4 sm:$0xff]  }
  0x6b   :  { %2645 = vmatpush1.bf16.msra.mxu1 %v3953_v0  ;;  %v4031_v0 = vld [vmem:[%s5824_s1 + $0x270] ss:$8 sps:$4 sm:$0xff]  }
  0x6c   :  { %2891 = vmatpush1.bf16.msra.mxu0 %v3956_v1  ;;  %2646 = vmatprep.subr.bf16.mxu1 %v3961_v2  ;;  %v4034_v1 = vld [vmem:[%s5824_s1 + $0x870] ss:$8 sps:$4 sm:$0xff]   ;;  %v4039_v2 = vld [vmem:[%s5824_s1 + $0x284] ss:$8 sps:$4 sm:$0xff]  }
  0x6d   :  { %2892 = vmatprep.subr.bf16.mxu0 %v3964_v3  ;;  %v4042_v3 = vld [vmem:[%s5824_s1 + $0x884] ss:$8 sps:$4 sm:$0xff]  }
  0x6f   :  { %2647 = vmatpush1.bf16.msra.mxu1 %v3959_v4  ;;  %v4037_v4 = vld [vmem:[%s5824_s1 + $0x280] ss:$8 sps:$4 sm:$0xff]  }
  0x70   :  { %2893 = vmatpush1.bf16.msra.mxu0 %v3962_v5  ;;  %2648 = vmatprep.subr.bf16.mxu1 %v3967_v6  ;;  %v4040_v5 = vld [vmem:[%s5824_s1 + $0x880] ss:$8 sps:$4 sm:$0xff]   ;;  %v4045_v6 = vld [vmem:[%s5824_s1 + $0x294] ss:$8 sps:$4 sm:$0xff]  }
  0x71   :  { %2894 = vmatprep.subr.bf16.mxu0 %v3970_v7  ;;  %v4048_v7 = vld [vmem:[%s5824_s1 + $0x894] ss:$8 sps:$4 sm:$0xff]  }
  0x73   :  { %2649 = vmatpush1.bf16.msra.mxu1 %v3965_v8  ;;  %v4043_v8 = vld [vmem:[%s5824_s1 + $0x290] ss:$8 sps:$4 sm:$0xff]  }
  0x74   :  { %2895 = vmatpush1.bf16.msra.mxu0 %v3968_v9  ;;  %2650 = vmatprep.subr.bf16.mxu1 %v3973_v10  ;;  %v4046_v9 = vld [vmem:[%s5824_s1 + $0x890] ss:$8 sps:$4 sm:$0xff]   ;;  %v4051_v10 = vld [vmem:[%s5824_s1 + $0x2a4] ss:$8 sps:$4 sm:$0xff]  }
  0x75   :  { %2896 = vmatprep.subr.bf16.mxu0 %v3976_v11  ;;  %v4054_v11 = vld [vmem:[%s5824_s1 + $0x8a4] ss:$8 sps:$4 sm:$0xff]  }
  0x77   :  { %2651 = vmatpush1.bf16.msra.mxu1 %v3971_v12  ;;  %v4049_v12 = vld [vmem:[%s5824_s1 + $0x2a0] ss:$8 sps:$4 sm:$0xff]  }
  0x78   :  { %2897 = vmatpush1.bf16.msra.mxu0 %v3974_v13  ;;  %2652 = vmatprep.subr.bf16.mxu1 %v3979_v14  ;;  %v4052_v13 = vld [vmem:[%s5824_s1 + $0x8a0] ss:$8 sps:$4 sm:$0xff]   ;;  %v4057_v14 = vld [vmem:[%s5824_s1 + $0x2b4] ss:$8 sps:$4 sm:$0xff]  }
  0x79   :  { %2898 = vmatprep.subr.bf16.mxu0 %v3982_v15  ;;  %v4060_v15 = vld [vmem:[%s5824_s1 + $0x8b4] ss:$8 sps:$4 sm:$0xff]  }
  0x7b   :  { %2653 = vmatpush1.bf16.msra.mxu1 %v3977_v19  ;;  %v4058_v19 = vld [vmem:[%s5824_s1 + $0x8b0] ss:$8 sps:$4 sm:$0xff]  }
  0x7c   :  { %2899 = vmatpush1.bf16.msra.mxu0 %v3980_v20  ;;  %2654 = vmatprep.subr.bf16.mxu1 %v3985_v21  ;;  %v4063_v20 = vld [vmem:[%s5824_s1 + $0x2c4] ss:$8 sps:$4 sm:$0xff]  }
  0x7d   :  { %2900 = vmatprep.subr.bf16.mxu0 %v3988_v52  ;;  %v4066_v21 = vld [vmem:[%s5824_s1 + $0x8c4] ss:$8 sps:$4 sm:$0xff]   ;;  %v4061_v52 = vld [vmem:[%s5824_s1 + $0x2c0] ss:$8 sps:$4 sm:$0xff]  }
  0x7f   :  { %2655 = vmatpush1.bf16.msra.mxu1 %v3983_v23  ;;  %v4064_v23 = vld [vmem:[%s5824_s1 + $0x8c0] ss:$8 sps:$4 sm:$0xff]  }
  0x80   :  { %2901 = vmatpush1.bf16.msra.mxu0 %v3986_v24  ;;  %2665 = vmatprep.subr.bf16.mxu1 %v3991_v25  ;;  %v4069_v24 = vld [vmem:[%s5824_s1 + $0x2d4] ss:$8 sps:$4 sm:$0xff]  }
  0x81   :  { %2911 = vmatprep.subr.bf16.mxu0 %v3994_v26  ;;  %v4072_v25 = vld [vmem:[%s5824_s1 + $0x8d4] ss:$8 sps:$4 sm:$0xff]   ;;  %v4067_v26 = vld [vmem:[%s5824_s1 + $0x2d0] ss:$8 sps:$4 sm:$0xff]  }
  0x82   :  { %2657 = vmatmul.mubr.bf16.vlgmr.msra.gmra.mrb[0].mxu1 %v479_v28  ;;  %v4075_v28 = vld [vmem:[%s5824_s1 + $0x2e4] ss:$8 sps:$4 sm:$0xff]  }
  0x83   :  { %2903 = vmatmul.mubr.bf16.vlgmr.msra.gmra.mrb[0].mxu0 %v529_v29  ;;  %2666 = vmatpush1.bf16.msra.mxu1 %v3989_v30  ;;  %v4078_v29 = vld [vmem:[%s5824_s1 + $0x8e4] ss:$8 sps:$4 sm:$0xff]   ;;  %v4073_v30 = vld [vmem:[%s5824_s1 + $0x2e0] ss:$8 sps:$4 sm:$0xff]  }
  0x84   :  { %2912 = vmatpush1.bf16.msra.mxu0 %v3992_v31  ;;  %2667 = vmatprep.subr.bf16.mxu1 %v3997_v32  ;;  %v4076_v31 = vld [vmem:[%s5824_s1 + $0x8e0] ss:$8 sps:$4 sm:$0xff]   ;;  %v4081_v32 = vld [vmem:[%s5824_s1 + $0x2f4] ss:$8 sps:$4 sm:$0xff]  }
  0x85   :  { %2913 = vmatprep.subr.bf16.mxu0 %v4000_v17  ;;  %2697 = vmatprep.mubr.bf16.mxu1 %v4901_v18  ;;  %v4084_v17 = vld [vmem:[%s5824_s1 + $0x8f4] ss:$8 sps:$4 sm:$0xff]  }
  0x86   :  { %2943 = vmatprep.mubr.bf16.mxu0 %v4931_v41 }
  0x87   :  { %2668 = vmatpush1.bf16.msra.mxu1 %v3995_v34  ;;  %v4079_v34 = vld [vmem:[%s5824_s1 + $0x2f0] ss:$8 sps:$4 sm:$0xff]  }
  0x88   :  { %2914 = vmatpush1.bf16.msra.mxu0 %v3998_v36  ;;  %2669 = vmatprep.subr.bf16.mxu1 %v4003_v37  ;;  %v4082_v36 = vld [vmem:[%s5824_s1 + $0x8f0] ss:$8 sps:$4 sm:$0xff]   ;;  %v4087_v37 = vld [vmem:[%s5824_s1 + $0x304] ss:$8 sps:$4 sm:$0xff]  }
  0x89   :  { %2915 = vmatprep.subr.bf16.mxu0 %v4006_v38  ;;  %v4090_v38 = vld [vmem:[%s5824_s1 + $0x904] ss:$8 sps:$4 sm:$0xff]  }
  0x8b   :  { %2670 = vmatpush1.bf16.msra.mxu1 %v4001_v40  ;;  %v5104_v40 = vrot.slane %v4868_v22, %v4596_v49  ;;  %v4096_v22 = vld [vmem:[%s5824_s1 + $0x914] ss:$8 sps:$4 sm:$0xff]  }
  0x8c   :  { %2916 = vmatpush1.bf16.msra.mxu0 %v4004_v43  ;;  %2671 = vmatprep.subr.bf16.mxu1 %v4009_v44  ;;  %v5108_v43 = vrot.slane %v4913_v35, %v4596_v49  ;;  %v4088_v44 = vld [vmem:[%s5824_s1 + $0x900] ss:$8 sps:$4 sm:$0xff]   ;;  %v482_v35 = vcombine.high %v4901_v18, %v4901_v18  ;;  %v4099_v18 = vld [vmem:[%s5824_s1 + $0x324] ss:$8 sps:$4 sm:$0xff]  }
  0x8d   :  { %2917 = vmatprep.subr.bf16.mxu0 %v4012_v45  ;;  %v4093_v45 = vld [vmem:[%s5824_s1 + $0x314] ss:$8 sps:$4 sm:$0xff]  }
  0x8f   :  { %2672 = vmatpush1.bf16.msra.mxu1 %v4007_v46  ;;  %v579_v46 = vcombine.high %v4931_v41, %v4931_v41  ;;  %v4102_v41 = vld [vmem:[%s5824_s1 + $0x924] ss:$8 sps:$4 sm:$0xff]  }
  0x90   :  { %2918 = vmatpush1.bf16.msra.mxu0 %v4010_v47  ;;  %2673 = vmatprep.subr.bf16.mxu1 %v4015_v48  ;;  %v4091_v47 = vld [vmem:[%s5824_s1 + $0x310] ss:$8 sps:$4 sm:$0xff]  }
  0x91   :  { %2919 = vmatprep.subr.bf16.mxu0 %v4018_v50  ;;  %v4094_v48 = vld [vmem:[%s5824_s1 + $0x910] ss:$8 sps:$4 sm:$0xff]   ;;  %v4097_v50 = vld [vmem:[%s5824_s1 + $0x320] ss:$8 sps:$4 sm:$0xff]  }
  0x93   :  { %2674 = vmatpush1.bf16.msra.mxu1 %v4013_v51  ;;  %v4100_v51 = vld [vmem:[%s5824_s1 + $0x920] ss:$8 sps:$4 sm:$0xff]  }
  0x94   :  { %2920 = vmatpush1.bf16.msra.mxu0 %v4016_v53  ;;  %2675 = vmatprep.subr.bf16.mxu1 %v4021_v54  ;;  %v4105_v53 = vld [vmem:[%s5824_s1 + $0x334] ss:$8 sps:$4 sm:$0xff]  }
  0x95   :  { %2921 = vmatprep.subr.bf16.mxu0 %v4024_v55  ;;  %v4108_v54 = vld [vmem:[%s5824_s1 + $0x934] ss:$8 sps:$4 sm:$0xff]   ;;  %v4103_v55 = vld [vmem:[%s5824_s1 + $0x330] ss:$8 sps:$4 sm:$0xff]  }
  0x97   :  { %2676 = vmatpush1.bf16.msra.mxu1 %v4019_v56  ;;  %v4106_v56 = vld [vmem:[%s5824_s1 + $0x930] ss:$8 sps:$4 sm:$0xff]  }
  0x98   :  { %2922 = vmatpush1.bf16.msra.mxu0 %v4022_v57  ;;  %2677 = vmatprep.subr.bf16.mxu1 %v4027_v58  ;;  %v4111_v57 = vld [vmem:[%s5824_s1 + $0x344] ss:$8 sps:$4 sm:$0xff]  }
  0x99   :  { %2923 = vmatprep.subr.bf16.mxu0 %v4030_v59  ;;  %v4114_v58 = vld [vmem:[%s5824_s1 + $0x944] ss:$8 sps:$4 sm:$0xff]   ;;  %v4109_v59 = vld [vmem:[%s5824_s1 + $0x340] ss:$8 sps:$4 sm:$0xff]  }
  0x9b   :  { %2678 = vmatpush1.bf16.msra.mxu1 %v4025_v60  ;;  %v4112_v60 = vld [vmem:[%s5824_s1 + $0x940] ss:$8 sps:$4 sm:$0xff]  }
  0x9c   :  { %2924 = vmatpush1.bf16.msra.mxu0 %v4028_v61  ;;  %2679 = vmatprep.subr.bf16.mxu1 %v4033_v62  ;;  %v4117_v61 = vld [vmem:[%s5824_s1 + $0x354] ss:$8 sps:$4 sm:$0xff]  }
  0x9d   :  { %2925 = vmatprep.subr.bf16.mxu0 %v4036_v63  ;;  %v4120_v62 = vld [vmem:[%s5824_s1 + $0x954] ss:$8 sps:$4 sm:$0xff]   ;;  %v4115_v63 = vld [vmem:[%s5824_s1 + $0x350] ss:$8 sps:$4 sm:$0xff]  }
  0x9f   :  { %2680 = vmatpush1.bf16.msra.mxu1 %v4031_v0  ;;  %v4118_v0 = vld [vmem:[%s5824_s1 + $0x950] ss:$8 sps:$4 sm:$0xff]  }
  0xa0   :  { %2926 = vmatpush1.bf16.msra.mxu0 %v4034_v1  ;;  %2681 = vmatprep.subr.bf16.mxu1 %v4039_v2  ;;  %v4123_v1 = vld [vmem:[%s5824_s1 + $0x364] ss:$8 sps:$4 sm:$0xff]  }
  0xa1   :  { %2927 = vmatprep.subr.bf16.mxu0 %v4042_v3  ;;  %v4126_v2 = vld [vmem:[%s5824_s1 + $0x964] ss:$8 sps:$4 sm:$0xff]   ;;  %v4121_v3 = vld [vmem:[%s5824_s1 + $0x360] ss:$8 sps:$4 sm:$0xff]  }
  0xa3   :  { %2682 = vmatpush1.bf16.msra.mxu1 %v4037_v4  ;;  %v4124_v4 = vld [vmem:[%s5824_s1 + $0x960] ss:$8 sps:$4 sm:$0xff]  }
  0xa4   :  { %2928 = vmatpush1.bf16.msra.mxu0 %v4040_v5  ;;  %2683 = vmatprep.subr.bf16.mxu1 %v4045_v6  ;;  %v4129_v5 = vld [vmem:[%s5824_s1 + $0x374] ss:$8 sps:$4 sm:$0xff]  }
  0xa5   :  { %2929 = vmatprep.subr.bf16.mxu0 %v4048_v7  ;;  %v4132_v6 = vld [vmem:[%s5824_s1 + $0x974] ss:$8 sps:$4 sm:$0xff]   ;;  %v4127_v7 = vld [vmem:[%s5824_s1 + $0x370] ss:$8 sps:$4 sm:$0xff]  }
  0xa7   :  { %2684 = vmatpush1.bf16.msra.mxu1 %v4043_v8  ;;  %v4130_v8 = vld [vmem:[%s5824_s1 + $0x970] ss:$8 sps:$4 sm:$0xff]  }
  0xa8   :  { %2930 = vmatpush1.bf16.msra.mxu0 %v4046_v9  ;;  %2685 = vmatprep.subr.bf16.mxu1 %v4051_v10  ;;  %v4135_v9 = vld [vmem:[%s5824_s1 + $0x384] ss:$8 sps:$4 sm:$0xff]  }
  0xa9   :  { %2931 = vmatprep.subr.bf16.mxu0 %v4054_v11  ;;  %v4138_v10 = vld [vmem:[%s5824_s1 + $0x984] ss:$8 sps:$4 sm:$0xff]   ;;  %v4133_v11 = vld [vmem:[%s5824_s1 + $0x380] ss:$8 sps:$4 sm:$0xff]  }
  0xab   :  { %2686 = vmatpush1.bf16.msra.mxu1 %v4049_v12  ;;  %v4136_v12 = vld [vmem:[%s5824_s1 + $0x980] ss:$8 sps:$4 sm:$0xff]  }
  0xac   :  { %2932 = vmatpush1.bf16.msra.mxu0 %v4052_v13  ;;  %2687 = vmatprep.subr.bf16.mxu1 %v4057_v14  ;;  %v4141_v13 = vld [vmem:[%s5824_s1 + $0x394] ss:$8 sps:$4 sm:$0xff]  }
  0xad   :  { %2933 = vmatprep.subr.bf16.mxu0 %v4060_v15  ;;  %v4144_v14 = vld [vmem:[%s5824_s1 + $0x994] ss:$8 sps:$4 sm:$0xff]   ;;  %v4139_v15 = vld [vmem:[%s5824_s1 + $0x390] ss:$8 sps:$4 sm:$0xff]  }
  0xaf   :  { %2688 = vmatpush1.bf16.msra.mxu1 %v4055_v16  ;;  %v4142_v16 = vld [vmem:[%s5824_s1 + $0x990] ss:$8 sps:$4 sm:$0xff]  }
  0xb0   :  { %2934 = vmatpush1.bf16.msra.mxu0 %v4058_v19  ;;  %2689 = vmatprep.subr.bf16.mxu1 %v4063_v20  ;;  %v4147_v19 = vld [vmem:[%s5824_s1 + $0x3a4] ss:$8 sps:$4 sm:$0xff]  }
  0xb1   :  { %2935 = vmatprep.subr.bf16.mxu0 %v4066_v21  ;;  %v4150_v20 = vld [vmem:[%s5824_s1 + $0x9a4] ss:$8 sps:$4 sm:$0xff]   ;;  %v4145_v21 = vld [vmem:[%s5824_s1 + $0x3a0] ss:$8 sps:$4 sm:$0xff]  }
  0xb3   :  { %2690 = vmatpush1.bf16.msra.mxu1 %v4061_v52  ;;  %v4148_v52 = vld [vmem:[%s5824_s1 + $0x9a0] ss:$8 sps:$4 sm:$0xff]  }
  0xb4   :  { %2936 = vmatpush1.bf16.msra.mxu0 %v4064_v23  ;;  %2691 = vmatprep.subr.bf16.mxu1 %v4069_v24  ;;  %v4153_v23 = vld [vmem:[%s5824_s1 + $0x3b4] ss:$8 sps:$4 sm:$0xff]  }
  0xb5   :  { %2937 = vmatprep.subr.bf16.mxu0 %v4072_v25  ;;  %v4156_v24 = vld [vmem:[%s5824_s1 + $0x9b4] ss:$8 sps:$4 sm:$0xff]   ;;  %v4151_v25 = vld [vmem:[%s5824_s1 + $0x3b0] ss:$8 sps:$4 sm:$0xff]  }
  0xb7   :  { %2692 = vmatpush1.bf16.msra.mxu1 %v4067_v26  ;;  %v4154_v26 = vld [vmem:[%s5824_s1 + $0x9b0] ss:$8 sps:$4 sm:$0xff]  }
  0xb8   :  { %2938 = vmatpush1.bf16.msra.mxu0 %v4070_v27  ;;  %2693 = vmatprep.subr.bf16.mxu1 %v4075_v28  ;;  %v4159_v27 = vld [vmem:[%s5824_s1 + $0x3c4] ss:$8 sps:$4 sm:$0xff]  }
  0xb9   :  { %2939 = vmatprep.subr.bf16.mxu0 %v4078_v29  ;;  %v4162_v28 = vld [vmem:[%s5824_s1 + $0x9c4] ss:$8 sps:$4 sm:$0xff]   ;;  %v4157_v29 = vld [vmem:[%s5824_s1 + $0x3c0] ss:$8 sps:$4 sm:$0xff]  }
  0xbb   :  { %2694 = vmatpush1.bf16.msra.mxu1 %v4073_v30  ;;  %v4160_v30 = vld [vmem:[%s5824_s1 + $0x9c0] ss:$8 sps:$4 sm:$0xff]  }
  0xbc   :  { %2940 = vmatpush1.bf16.msra.mxu0 %v4076_v31  ;;  %2695 = vmatprep.subr.bf16.mxu1 %v4081_v32  ;;  %v4165_v31 = vld [vmem:[%s5824_s1 + $0x3d4] ss:$8 sps:$4 sm:$0xff]  }
  0xbd   :  { %2941 = vmatprep.subr.bf16.mxu0 %v4084_v17  ;;  %v4168_v32 = vld [vmem:[%s5824_s1 + $0x9d4] ss:$8 sps:$4 sm:$0xff]   ;;  %v4163_v17 = vld [vmem:[%s5824_s1 + $0x3d0] ss:$8 sps:$4 sm:$0xff]  }
  0xbf   :  { %2696 = vmatpush1.bf16.msra.mxu1 %v4079_v34  ;;  %v4166_v34 = vld [vmem:[%s5824_s1 + $0x9d0] ss:$8 sps:$4 sm:$0xff]  }
  0xc0   :  { %2942 = vmatpush1.bf16.msra.mxu0 %v4082_v36  ;;  %2706 = vmatprep.subr.bf16.mxu1 %v4087_v37  ;;  %v4171_v36 = vld [vmem:[%s5824_s1 + $0x3e4] ss:$8 sps:$4 sm:$0xff]  }
  0xc1   :  { %2952 = vmatprep.subr.bf16.mxu0 %v4090_v38  ;;  %v4174_v37 = vld [vmem:[%s5824_s1 + $0x9e4] ss:$8 sps:$4 sm:$0xff]   ;;  %v532_v38 = vcombine.high %v4906_v33, %v4906_v33  ;;  %v4180_v33 = vld [vmem:[%s5824_s1 + $0x9f4] ss:$8 sps:$4 sm:$0xff]  }
  0xc2   :  { %2698 = vmatmul.mubr.bf16.vlgmr.msra.gmra.mrb[0].mxu1 %v5104_v40 }
  0xc3   :  { %2944 = vmatmul.mubr.bf16.vlgmr.msra.gmra.mrb[0].mxu0 %v5108_v43  ;;  %2707 = vmatpush1.bf16.msra.mxu1 %v4085_v39  ;;  %v4169_v39 = vld [vmem:[%s5824_s1 + $0x3e0] ss:$8 sps:$4 sm:$0xff]  }
  0xc4   :  { %2953 = vmatpush1.bf16.msra.mxu0 %v4088_v44  ;;  %2708 = vmatprep.subr.bf16.mxu1 %v4093_v45  ;;  %v4172_v44 = vld [vmem:[%s5824_s1 + $0x9e0] ss:$8 sps:$4 sm:$0xff]   ;;  %v4177_v45 = vld [vmem:[%s5824_s1 + $0x3f4] ss:$8 sps:$4 sm:$0xff]  }
  0xc5   :  { %2954 = vmatprep.subr.bf16.mxu0 %v4096_v22  ;;  %2738 = vmatprep.mubr.bf16.mxu1 %v482_v35  ;;  %v5298_v22 = vld.sshfl [vmem:[%s5823_s0 + $0x8] sm:$0xff pattern:$0x75316420]  ;;  %v5301_v35 = vrot.slane %v532_v38, %v4596_v49 }
  0xc6   :  { %2984 = vmatprep.mubr.bf16.mxu0 %v579_v46  ;;  %v4175_v46 = vld [vmem:[%s5824_s1 + $0x3f0] ss:$8 sps:$4 sm:$0xff]  }
  0xc7   :  { %2709 = vmatpush1.bf16.msra.mxu1 %v4091_v47  ;;  %v4178_v47 = vld [vmem:[%s5824_s1 + $0x9f0] ss:$8 sps:$4 sm:$0xff]  }
  0xc8   :  { %2955 = vmatpush1.bf16.msra.mxu0 %v4094_v48  ;;  %2710 = vmatprep.subr.bf16.mxu1 %v4099_v18  ;;  %v4183_v48 = vld [vmem:[%s5824_s1 + $0x404] ss:$8 sps:$4 sm:$0xff]  }
  0xc9   :  { %2956 = vmatprep.subr.bf16.mxu0 %v4102_v41  ;;  %v4186_v18 = vld [vmem:[%s5824_s1 + $0xa04] ss:$8 sps:$4 sm:$0xff]   ;;  %v498_v41 = vcombine.high %v5298_v22, %v5298_v22 }
  0xcb   :  { %2711 = vmatpush1.bf16.msra.mxu1 %v4097_v50  ;;  %v548_v50 = vcombine.high %v5301_v35, %v5301_v35 }
  0xcc   :  { %2957 = vmatpush1.bf16.msra.mxu0 %v4100_v51  ;;  %2712 = vmatprep.subr.bf16.mxu1 %v4105_v53  ;;  %v4181_v51 = vld [vmem:[%s5824_s1 + $0x400] ss:$8 sps:$4 sm:$0xff]   ;;  %v480_v53 = vcombine.high %v5104_v40, %v5104_v40  ;;  %v4187_v40 = vld [vmem:[%s5824_s1 + $0x410] ss:$8 sps:$4 sm:$0xff]  }
  0xcd   :  { %2958 = vmatprep.subr.bf16.mxu0 %v4108_v54  ;;  %v577_v54 = vcombine.high %v5108_v43, %v5108_v43  ;;  %v4190_v43 = vld [vmem:[%s5824_s1 + $0xa10] ss:$8 sps:$4 sm:$0xff]  }
  0xcf   :  { %2713 = vmatpush1.bf16.msra.mxu1 %v4103_v55  ;;  %v4184_v55 = vld [vmem:[%s5824_s1 + $0xa00] ss:$8 sps:$4 sm:$0xff]  }
  0xd0   :  { %2959 = vmatpush1.bf16.msra.mxu0 %v4106_v56  ;;  %2714 = vmatprep.subr.bf16.mxu1 %v4111_v57  ;;  %v4189_v56 = vld [vmem:[%s5824_s1 + $0x414] ss:$8 sps:$4 sm:$0xff]  }
  0xd1   :  { %2960 = vmatprep.subr.bf16.mxu0 %v4114_v58  ;;  %v4192_v57 = vld [vmem:[%s5824_s1 + $0xa14] ss:$8 sps:$4 sm:$0xff]   ;;  %v5342_v58 = vrot.slane %v498_v41, %v4596_v49 }
  0xd3   :  { %2715 = vmatpush1.bf16.msra.mxu1 %v4109_v59  ;;  %v5345_v59 = vrot.slane %v548_v50, %v4596_v49 }
  0xd4   :  { %2961 = vmatpush1.bf16.msra.mxu0 %v4112_v60  ;;  %2716 = vmatprep.subr.bf16.mxu1 %v4117_v61  ;;  %v4195_v60 = vld [vmem:[%s5824_s1 + $0x424] ss:$8 sps:$4 sm:$0xff]  }
  0xd5   :  { %2962 = vmatprep.subr.bf16.mxu0 %v4120_v62  ;;  %v4198_v61 = vld [vmem:[%s5824_s1 + $0xa24] ss:$8 sps:$4 sm:$0xff]   ;;  %v4193_v62 = vld [vmem:[%s5824_s1 + $0x420] ss:$8 sps:$4 sm:$0xff]  }
  0xd7   :  { %2717 = vmatpush1.bf16.msra.mxu1 %v4115_v63  ;;  %v4196_v63 = vld [vmem:[%s5824_s1 + $0xa20] ss:$8 sps:$4 sm:$0xff]  }
  0xd8   :  { %2963 = vmatpush1.bf16.msra.mxu0 %v4118_v0  ;;  %2718 = vmatprep.subr.bf16.mxu1 %v4123_v1  ;;  %v4201_v0 = vld [vmem:[%s5824_s1 + $0x434] ss:$8 sps:$4 sm:$0xff]  }
  0xd9   :  { %2964 = vmatprep.subr.bf16.mxu0 %v4126_v2  ;;  %v4204_v1 = vld [vmem:[%s5824_s1 + $0xa34] ss:$8 sps:$4 sm:$0xff]   ;;  %v4199_v2 = vld [vmem:[%s5824_s1 + $0x430] ss:$8 sps:$4 sm:$0xff]  }
  0xdb   :  { %2719 = vmatpush1.bf16.msra.mxu1 %v4121_v3  ;;  %v4202_v3 = vld [vmem:[%s5824_s1 + $0xa30] ss:$8 sps:$4 sm:$0xff]  }
  0xdc   :  { %2965 = vmatpush1.bf16.msra.mxu0 %v4124_v4  ;;  %2720 = vmatprep.subr.bf16.mxu1 %v4129_v5  ;;  %v4207_v4 = vld [vmem:[%s5824_s1 + $0x444] ss:$8 sps:$4 sm:$0xff]  }
  0xdd   :  { %2966 = vmatprep.subr.bf16.mxu0 %v4132_v6  ;;  %v4210_v5 = vld [vmem:[%s5824_s1 + $0xa44] ss:$8 sps:$4 sm:$0xff]   ;;  %v4205_v6 = vld [vmem:[%s5824_s1 + $0x440] ss:$8 sps:$4 sm:$0xff]  }
  0xdf   :  { %2721 = vmatpush1.bf16.msra.mxu1 %v4127_v7  ;;  %v4208_v7 = vld [vmem:[%s5824_s1 + $0xa40] ss:$8 sps:$4 sm:$0xff]  }
  0xe0   :  { %2967 = vmatpush1.bf16.msra.mxu0 %v4130_v8  ;;  %2722 = vmatprep.subr.bf16.mxu1 %v4135_v9  ;;  %v4213_v8 = vld [vmem:[%s5824_s1 + $0x454] ss:$8 sps:$4 sm:$0xff]  }
  0xe1   :  { %2968 = vmatprep.subr.bf16.mxu0 %v4138_v10  ;;  %v4216_v9 = vld [vmem:[%s5824_s1 + $0xa54] ss:$8 sps:$4 sm:$0xff]  }
  0xe3   :  { %2723 = vmatpush1.bf16.msra.mxu1 %v4133_v11 }
  0xe4   :  { %2969 = vmatpush1.bf16.msra.mxu0 %v4136_v12  ;;  %2724 = vmatprep.subr.bf16.mxu1 %v4141_v13 }
  0xe5   :  { %2970 = vmatprep.subr.bf16.mxu0 %v4144_v14 }
  0xe7   :  { %2725 = vmatpush1.bf16.msra.mxu1 %v4139_v15 }
  0xe8   :  { %2971 = vmatpush1.bf16.msra.mxu0 %v4142_v16  ;;  %2726 = vmatprep.subr.bf16.mxu1 %v4147_v19 }
  0xe9   :  { %2972 = vmatprep.subr.bf16.mxu0 %v4150_v20 }
  0xeb   :  { %2727 = vmatpush1.bf16.msra.mxu1 %v4145_v21 }
  0xec   :  { %2973 = vmatpush1.bf16.msra.mxu0 %v4148_v52  ;;  %2728 = vmatprep.subr.bf16.mxu1 %v4153_v23 }
  0xed   :  { %2974 = vmatprep.subr.bf16.mxu0 %v4156_v24 }
  0xef   :  { %2729 = vmatpush1.bf16.msra.mxu1 %v4151_v25 }
  0xf0   :  { %2975 = vmatpush1.bf16.msra.mxu0 %v4154_v26  ;;  %2730 = vmatprep.subr.bf16.mxu1 %v4159_v27 }
  0xf1   :  { %2976 = vmatprep.subr.bf16.mxu0 %v4162_v28 }
  0xf3   :  { %2731 = vmatpush1.bf16.msra.mxu1 %v4157_v29 }
  0xf4   :  { %2977 = vmatpush1.bf16.msra.mxu0 %v4160_v30  ;;  %2732 = vmatprep.subr.bf16.mxu1 %v4165_v31 }
  0xf5   :  { %2978 = vmatprep.subr.bf16.mxu0 %v4168_v32 }
  0xf7   :  { %2733 = vmatpush1.bf16.msra.mxu1 %v4163_v17 }
  0xf8   :  { %2979 = vmatpush1.bf16.msra.mxu0 %v4166_v34  ;;  %2734 = vmatprep.subr.bf16.mxu1 %v4171_v36 }
  0xf9   :  { %2980 = vmatprep.subr.bf16.mxu0 %v4174_v37 }
  0xfb   :  { %2735 = vmatpush1.bf16.msra.mxu1 %v4169_v39 }
  0xfc   :  { %2981 = vmatpush1.bf16.msra.mxu0 %v4172_v44  ;;  %2736 = vmatprep.subr.bf16.mxu1 %v4177_v45 }
  0xfd   :  { %2982 = vmatprep.subr.bf16.mxu0 %v4180_v33 }
  0xff   :  { %2737 = vmatpush1.bf16.msra.mxu1 %v4175_v46 }
 0x100   :  { %2983 = vmatpush1.bf16.msra.mxu0 %v4178_v47  ;;  %2747 = vmatprep.subr.bf16.mxu1 %v4183_v48 }
 0x101   :  { %2993 = vmatprep.subr.bf16.mxu0 %v4186_v18 }
 0x102   :  { %2739 = vmatmul.mubr.bf16.vlgmr.msra.gmra.mrb[0].mxu1 %v480_v53 }
 0x103   :  { %2985 = vmatmul.mubr.bf16.vlgmr.msra.gmra.mrb[0].mxu0 %v577_v54  ;;  %2748 = vmatpush1.bf16.msra.mxu1 %v4181_v51 }
 0x104   :  { %2994 = vmatpush1.bf16.msra.mxu0 %v4184_v55  ;;  %2749 = vmatprep.subr.bf16.mxu1 %v4189_v56 }
 0x105   :  { %2995 = vmatprep.subr.bf16.mxu0 %v4192_v57  ;;  %2779 = vmatprep.mubr.bf16.mxu1 %v5342_v58 }
 0x106   :  { %3025 = vmatprep.mubr.bf16.mxu0 %v5345_v59 }
 0x107   :  { %2750 = vmatpush1.bf16.msra.mxu1 %v4187_v40 }
 0x108   :  { %2996 = vmatpush1.bf16.msra.mxu0 %v4190_v43  ;;  %2751 = vmatprep.subr.bf16.mxu1 %v4195_v60 }
 0x109   :  { %2997 = vmatprep.subr.bf16.mxu0 %v4198_v61 }
 0x10b   :  { %2752 = vmatpush1.bf16.msra.mxu1 %v4193_v62 }
 0x10c   :  { %2998 = vmatpush1.bf16.msra.mxu0 %v4196_v63  ;;  %2753 = vmatprep.subr.bf16.mxu1 %v4201_v0 }
 0x10d   :  { %2999 = vmatprep.subr.bf16.mxu0 %v4204_v1 }
 0x10f   :  { %2754 = vmatpush1.bf16.msra.mxu1 %v4199_v2 }
 0x110   :  { %3000 = vmatpush1.bf16.msra.mxu0 %v4202_v3  ;;  %2755 = vmatprep.subr.bf16.mxu1 %v4207_v4 }
 0x111   :  { %3001 = vmatprep.subr.bf16.mxu0 %v4210_v5 }
 0x112   :  { %10 = vsyncpa [#allocation3], 0  ;;  %v4211_v10 = vld [vmem:[%s5824_s1 + $0x450] ss:$8 sps:$4 sm:$0xff]   ;;  %v4219_v12 = vld [vmem:[%s5824_s1 + $0x464] ss:$8 sps:$4 sm:$0xff]   ;;  %v5525_v60 = vrot.slane %v5298_v22, %v4596_v49  ;;  %v5529_v61 = vrot.slane %v5301_v35, %v4596_v49  ;;  %v530_v0 = vcombine.high %v5342_v58, %v5342_v58  ;;  %v580_v1 = vcombine.high %v5345_v59, %v5345_v59 }
 0x113   :  { %2756 = vmatpush1.bf16.msra.mxu1 %v4205_v6  ;;  %v4214_v11 = vld [vmem:[%s5824_s1 + $0xa50] ss:$8 sps:$4 sm:$0xff]   ;;  %v4222_v13 = vld [vmem:[%s5824_s1 + $0xa64] ss:$8 sps:$4 sm:$0xff]   ;;  %v4217_v14 = vld [vmem:[%s5824_s1 + $0x460] ss:$8 sps:$4 sm:$0xff]  }
 0x114   :  { %3002 = vmatpush1.bf16.msra.mxu0 %v4208_v7  ;;  %2757 = vmatprep.subr.bf16.mxu1 %v4213_v8  ;;  %v4220_v15 = vld [vmem:[%s5824_s1 + $0xa60] ss:$8 sps:$4 sm:$0xff]   ;;  %v4225_v16 = vld [vmem:[%s5824_s1 + $0x474] ss:$8 sps:$4 sm:$0xff]   ;;  %v4223_v20 = vld [vmem:[%s5824_s1 + $0x470] ss:$8 sps:$4 sm:$0xff]  }
 0x115   :  { %3003 = vmatprep.subr.bf16.mxu0 %v4216_v9  ;;  %v4228_v19 = vld [vmem:[%s5824_s1 + $0xa74] ss:$8 sps:$4 sm:$0xff]   ;;  %v4226_v21 = vld [vmem:[%s5824_s1 + $0xa70] ss:$8 sps:$4 sm:$0xff]   ;;  %v4231_v52 = vld [vmem:[%s5824_s1 + $0x484] ss:$8 sps:$4 sm:$0xff]  }
 0x116   :  { %v4234_v23 = vld [vmem:[%s5824_s1 + $0xa84] ss:$8 sps:$4 sm:$0xff]   ;;  %v4229_v24 = vld [vmem:[%s5824_s1 + $0x480] ss:$8 sps:$4 sm:$0xff]   ;;  %v4237_v26 = vld [vmem:[%s5824_s1 + $0x494] ss:$8 sps:$4 sm:$0xff]  }
 0x117   :  { %2758 = vmatpush1.bf16.msra.mxu1 %v4211_v10  ;;  %v4232_v25 = vld [vmem:[%s5824_s1 + $0xa80] ss:$8 sps:$4 sm:$0xff]   ;;  %v4240_v27 = vld [vmem:[%s5824_s1 + $0xa94] ss:$8 sps:$4 sm:$0xff]   ;;  %v4235_v28 = vld [vmem:[%s5824_s1 + $0x490] ss:$8 sps:$4 sm:$0xff]  }
 0x118   :  { %3004 = vmatpush1.bf16.msra.mxu0 %v4214_v11  ;;  %2759 = vmatprep.subr.bf16.mxu1 %v4219_v12  ;;  %v4238_v29 = vld [vmem:[%s5824_s1 + $0xa90] ss:$8 sps:$4 sm:$0xff]   ;;  %v4243_v30 = vld [vmem:[%s5824_s1 + $0x4a4] ss:$8 sps:$4 sm:$0xff]   ;;  %v4241_v32 = vld [vmem:[%s5824_s1 + $0x4a0] ss:$8 sps:$4 sm:$0xff]  }
 0x119   :  { %3005 = vmatprep.subr.bf16.mxu0 %v4222_v13  ;;  %v4246_v31 = vld [vmem:[%s5824_s1 + $0xaa4] ss:$8 sps:$4 sm:$0xff]   ;;  %v4244_v17 = vld [vmem:[%s5824_s1 + $0xaa0] ss:$8 sps:$4 sm:$0xff]   ;;  %v4249_v34 = vld [vmem:[%s5824_s1 + $0x4b4] ss:$8 sps:$4 sm:$0xff]  }
 0x11a   :  { %v4252_v36 = vld [vmem:[%s5824_s1 + $0xab4] ss:$8 sps:$4 sm:$0xff]   ;;  %v4247_v37 = vld [vmem:[%s5824_s1 + $0x4b0] ss:$8 sps:$4 sm:$0xff]   ;;  %v4255_v39 = vld [vmem:[%s5824_s1 + $0x4c4] ss:$8 sps:$4 sm:$0xff]  }
 0x11b   :  { %2760 = vmatpush1.bf16.msra.mxu1 %v4217_v14  ;;  %v4250_v38 = vld [vmem:[%s5824_s1 + $0xab0] ss:$8 sps:$4 sm:$0xff]   ;;  %v4258_v44 = vld [vmem:[%s5824_s1 + $0xac4] ss:$8 sps:$4 sm:$0xff]   ;;  %v4253_v45 = vld [vmem:[%s5824_s1 + $0x4c0] ss:$8 sps:$4 sm:$0xff]  }
 0x11c   :  { %3006 = vmatpush1.bf16.msra.mxu0 %v4220_v15  ;;  %2761 = vmatprep.subr.bf16.mxu1 %v4225_v16  ;;  %v4256_v33 = vld [vmem:[%s5824_s1 + $0xac0] ss:$8 sps:$4 sm:$0xff]   ;;  %v4261_v46 = vld [vmem:[%s5824_s1 + $0x4d4] ss:$8 sps:$4 sm:$0xff]   ;;  %v4259_v48 = vld [vmem:[%s5824_s1 + $0x4d0] ss:$8 sps:$4 sm:$0xff]  }
 0x11d   :  { %3007 = vmatprep.subr.bf16.mxu0 %v4228_v19  ;;  %v4264_v47 = vld [vmem:[%s5824_s1 + $0xad4] ss:$8 sps:$4 sm:$0xff]   ;;  %v4262_v18 = vld [vmem:[%s5824_s1 + $0xad0] ss:$8 sps:$4 sm:$0xff]   ;;  %v4267_v41 = vld [vmem:[%s5824_s1 + $0x4e4] ss:$8 sps:$4 sm:$0xff]  }
 0x11e   :  { %v4270_v50 = vld [vmem:[%s5824_s1 + $0xae4] ss:$8 sps:$4 sm:$0xff]   ;;  %v4265_v51 = vld [vmem:[%s5824_s1 + $0x4e0] ss:$8 sps:$4 sm:$0xff]   ;;  %v4273_v54 = vld [vmem:[%s5824_s1 + $0x4f4] ss:$8 sps:$4 sm:$0xff]  }
 0x11f   :  { %2762 = vmatpush1.bf16.msra.mxu1 %v4223_v20  ;;  %v4268_v53 = vld [vmem:[%s5824_s1 + $0xae0] ss:$8 sps:$4 sm:$0xff]   ;;  %v4276_v55 = vld [vmem:[%s5824_s1 + $0xaf4] ss:$8 sps:$4 sm:$0xff]   ;;  %v4271_v56 = vld [vmem:[%s5824_s1 + $0x4f0] ss:$8 sps:$4 sm:$0xff]  }
 0x120   :  { %3008 = vmatpush1.bf16.msra.mxu0 %v4226_v21  ;;  %2763 = vmatprep.subr.bf16.mxu1 %v4231_v52  ;;  %v4274_v57 = vld [vmem:[%s5824_s1 + $0xaf0] ss:$8 sps:$4 sm:$0xff]   ;;  %v4279_v40 = vld [vmem:[%s5824_s1 + $0x504] ss:$8 sps:$4 sm:$0xff]   ;;  %v4277_v62 = vld [vmem:[%s5824_s1 + $0x500] ss:$8 sps:$4 sm:$0xff]  }
 0x121   :  { %3009 = vmatprep.subr.bf16.mxu0 %v4234_v23  ;;  %v4283_v43 = vld [vmem:[%s5824_s1 + $0xb04] ss:$8 sps:$4 sm:$0xff]   ;;  %v4281_v63 = vld [vmem:[%s5824_s1 + $0xb00] ss:$8 sps:$4 sm:$0xff]   ;;  %v4286_v22 = vld [vmem:[%s5824_s1 + $0x514] ss:$8 sps:$4 sm:$0xff]  }
 0x122   :  { %v4289_v35 = vld [vmem:[%s5824_s1 + $0xb14] ss:$8 sps:$4 sm:$0xff]   ;;  %v4284_v2 = vld [vmem:[%s5824_s1 + $0x510] ss:$8 sps:$4 sm:$0xff]   ;;  %v4292_v58 = vld [vmem:[%s5824_s1 + $0x524] ss:$8 sps:$4 sm:$0xff]  }
 0x123   :  { %2764 = vmatpush1.bf16.msra.mxu1 %v4229_v24  ;;  %v4287_v3 = vld [vmem:[%s5824_s1 + $0xb10] ss:$8 sps:$4 sm:$0xff]   ;;  %v4295_v59 = vld [vmem:[%s5824_s1 + $0xb24] ss:$8 sps:$4 sm:$0xff]   ;;  %v4290_v4 = vld [vmem:[%s5824_s1 + $0x520] ss:$8 sps:$4 sm:$0xff]  }
 0x124   :  { %3010 = vmatpush1.bf16.msra.mxu0 %v4232_v25  ;;  %2765 = vmatprep.subr.bf16.mxu1 %v4237_v26  ;;  %v4293_v5 = vld [vmem:[%s5824_s1 + $0xb20] ss:$8 sps:$4 sm:$0xff]   ;;  %v4298_v6 = vld [vmem:[%s5824_s1 + $0x534] ss:$8 sps:$4 sm:$0xff]   ;;  %v4296_v8 = vld [vmem:[%s5824_s1 + $0x530] ss:$8 sps:$4 sm:$0xff]  }
 0x125   :  { %3011 = vmatprep.subr.bf16.mxu0 %v4240_v27  ;;  %v4301_v7 = vld [vmem:[%s5824_s1 + $0xb34] ss:$8 sps:$4 sm:$0xff]   ;;  %v4299_v9 = vld [vmem:[%s5824_s1 + $0xb30] ss:$8 sps:$4 sm:$0xff]   ;;  %v4304_v10 = vld [vmem:[%s5824_s1 + $0x544] ss:$8 sps:$4 sm:$0xff]  }
 0x126   :  { %v4307_v11 = vld [vmem:[%s5824_s1 + $0xb44] ss:$8 sps:$4 sm:$0xff]   ;;  %v4302_v12 = vld [vmem:[%s5824_s1 + $0x540] ss:$8 sps:$4 sm:$0xff]   ;;  %v4310_v14 = vld [vmem:[%s5824_s1 + $0x554] ss:$8 sps:$4 sm:$0xff]  }
 0x127   :  { %2766 = vmatpush1.bf16.msra.mxu1 %v4235_v28  ;;  %v4305_v13 = vld [vmem:[%s5824_s1 + $0xb40] ss:$8 sps:$4 sm:$0xff]   ;;  %v4313_v15 = vld [vmem:[%s5824_s1 + $0xb54] ss:$8 sps:$4 sm:$0xff]   ;;  %v4308_v16 = vld [vmem:[%s5824_s1 + $0x550] ss:$8 sps:$4 sm:$0xff]  }
 0x128   :  { %3012 = vmatpush1.bf16.msra.mxu0 %v4238_v29  ;;  %2767 = vmatprep.subr.bf16.mxu1 %v4243_v30  ;;  %v4311_v19 = vld [vmem:[%s5824_s1 + $0xb50] ss:$8 sps:$4 sm:$0xff]   ;;  %v4316_v20 = vld [vmem:[%s5824_s1 + $0x564] ss:$8 sps:$4 sm:$0xff]   ;;  %v4314_v52 = vld [vmem:[%s5824_s1 + $0x560] ss:$8 sps:$4 sm:$0xff]  }
 0x129   :  { %3013 = vmatprep.subr.bf16.mxu0 %v4246_v31  ;;  %v4319_v21 = vld [vmem:[%s5824_s1 + $0xb64] ss:$8 sps:$4 sm:$0xff]   ;;  %v4317_v23 = vld [vmem:[%s5824_s1 + $0xb60] ss:$8 sps:$4 sm:$0xff]   ;;  %v4322_v24 = vld [vmem:[%s5824_s1 + $0x574] ss:$8 sps:$4 sm:$0xff]  }
 0x12a   :  { %v4325_v25 = vld [vmem:[%s5824_s1 + $0xb74] ss:$8 sps:$4 sm:$0xff]   ;;  %v4320_v26 = vld [vmem:[%s5824_s1 + $0x570] ss:$8 sps:$4 sm:$0xff]   ;;  %v4328_v28 = vld [vmem:[%s5824_s1 + $0x584] ss:$8 sps:$4 sm:$0xff]  }
 0x12b   :  { %2768 = vmatpush1.bf16.msra.mxu1 %v4241_v32  ;;  %v4323_v27 = vld [vmem:[%s5824_s1 + $0xb70] ss:$8 sps:$4 sm:$0xff]   ;;  %v4331_v29 = vld [vmem:[%s5824_s1 + $0xb84] ss:$8 sps:$4 sm:$0xff]   ;;  %v4326_v30 = vld [vmem:[%s5824_s1 + $0x580] ss:$8 sps:$4 sm:$0xff]  }
 0x12c   :  { %3014 = vmatpush1.bf16.msra.mxu0 %v4244_v17  ;;  %2769 = vmatprep.subr.bf16.mxu1 %v4249_v34  ;;  %v4329_v31 = vld [vmem:[%s5824_s1 + $0xb80] ss:$8 sps:$4 sm:$0xff]   ;;  %v4334_v32 = vld [vmem:[%s5824_s1 + $0x594] ss:$8 sps:$4 sm:$0xff]   ;;  %v4332_v34 = vld [vmem:[%s5824_s1 + $0x590] ss:$8 sps:$4 sm:$0xff]  }
 0x12d   :  { %3015 = vmatprep.subr.bf16.mxu0 %v4252_v36  ;;  %v4337_v17 = vld [vmem:[%s5824_s1 + $0xb94] ss:$8 sps:$4 sm:$0xff]   ;;  %v4335_v36 = vld [vmem:[%s5824_s1 + $0xb90] ss:$8 sps:$4 sm:$0xff]   ;;  %vm2579_vm0 = vcmask 523264   ;;  %s4430_s19 = smov [#allocation2]  }
 0x12e   :  { %s3303_s20 = sshll.u32 %s4430_s19, 4  ;;  %vm3295_vm1 = vcmask 25600   ;;  %s3304_s20 = int_to_ptr.vmem [resolvable:$true] %s3303_s20 }
 0x12f   :  { %2770 = vmatpush1.bf16.msra.mxu1 %v4247_v37  ;;  %v4340_v37 = vld [vmem:[%s5824_s1 + $0x5a4] ss:$8 sps:$4 sm:$0xff]   ;;  %s4404_s21 = scalar_lea.vmem %s3304_s20, 32  ;;  %p4409_p1 = scmp.lt.s32.totalorder %s3304_s20, %s3304_s20 }
 0x130   :  { %3016 = vmatpush1.bf16.msra.mxu0 %v4250_v38  ;;  %2771 = vmatprep.subr.bf16.mxu1 %v4255_v39  ;;  %v4343_v38 = vld [vmem:[%s5824_s1 + $0xba4] ss:$8 sps:$4 sm:$0xff]   ;;  %v4338_v39 = vld [vmem:[%s5824_s1 + $0x5a0] ss:$8 sps:$4 sm:$0xff]   ;;  %p4405_p0 = scmp.ne.s32.totalorder %s3304_s20, %s4404_s21  ;;  %p4410_p2 = scmp.lt.s32.totalorder %s4404_s21, %s4404_s21 }
 0x131   :  { %3017 = vmatprep.subr.bf16.mxu0 %v4258_v44  ;;  %v4341_v44 = vld [vmem:[%s5824_s1 + $0xba0] ss:$8 sps:$4 sm:$0xff]  }
 0x132   :  { %p4411_p3 = por %p4410_p2, %p4409_p1 }
 0x133   :  { %2772 = vmatpush1.bf16.msra.mxu1 %v4253_v45  ;;  %v4346_v45 = vld [vmem:[%s5824_s1 + $0x5b4] ss:$8 sps:$4 sm:$0xff]  }
 0x134   :  { %3018 = vmatpush1.bf16.msra.mxu0 %v4256_v33  ;;  %2773 = vmatprep.subr.bf16.mxu1 %v4261_v46  ;;  %v4349_v33 = vld [vmem:[%s5824_s1 + $0xbb4] ss:$8 sps:$4 sm:$0xff]   ;;  %v4344_v46 = vld [vmem:[%s5824_s1 + $0x5b0] ss:$8 sps:$4 sm:$0xff]   ;;  %p4412_p4 = pnand %p4411_p3, %p4405_p0 }
 0x135   :  { %3019 = vmatprep.subr.bf16.mxu0 %v4264_v47  ;;  %v4347_v47 = vld [vmem:[%s5824_s1 + $0xbb0] ss:$8 sps:$4 sm:$0xff]  }
 0x137   :  { %2774 = vmatpush1.bf16.msra.mxu1 %v4259_v48  ;;  %v4352_v48 = vld [vmem:[%s5824_s1 + $0x5c4] ss:$8 sps:$4 sm:$0xff]  }
 0x138   :  { %3020 = vmatpush1.bf16.msra.mxu0 %v4262_v18  ;;  %2775 = vmatprep.subr.bf16.mxu1 %v4267_v41  ;;  %v4355_v18 = vld [vmem:[%s5824_s1 + $0xbc4] ss:$8 sps:$4 sm:$0xff]   ;;  %v4350_v41 = vld [vmem:[%s5824_s1 + $0x5c0] ss:$8 sps:$4 sm:$0xff]  }
 0x139   :  { %3021 = vmatprep.subr.bf16.mxu0 %v4270_v50  ;;  %v4353_v50 = vld [vmem:[%s5824_s1 + $0xbc0] ss:$8 sps:$4 sm:$0xff]  }
 0x13b   :  { %2776 = vmatpush1.bf16.msra.mxu1 %v4265_v51  ;;  %v4358_v51 = vld [vmem:[%s5824_s1 + $0x5d4] ss:$8 sps:$4 sm:$0xff]  }
 0x13c   :  { %3022 = vmatpush1.bf16.msra.mxu0 %v4268_v53  ;;  %2777 = vmatprep.subr.bf16.mxu1 %v4273_v54  ;;  %v4361_v53 = vld [vmem:[%s5824_s1 + $0xbd4] ss:$8 sps:$4 sm:$0xff]   ;;  %v4356_v54 = vld [vmem:[%s5824_s1 + $0x5d0] ss:$8 sps:$4 sm:$0xff]  }
 0x13d   :  { %3023 = vmatprep.subr.bf16.mxu0 %v4276_v55  ;;  %v4359_v55 = vld [vmem:[%s5824_s1 + $0xbd0] ss:$8 sps:$4 sm:$0xff]  }
 0x13f   :  { %2778 = vmatpush1.bf16.msra.mxu1 %v4271_v56  ;;  %v4364_v56 = vld [vmem:[%s5824_s1 + $0x5e4] ss:$8 sps:$4 sm:$0xff]  }
 0x140   :  { %3024 = vmatpush1.bf16.msra.mxu0 %v4274_v57  ;;  %2788 = vmatprep.subr.bf16.mxu1 %v4279_v40  ;;  %v4367_v57 = vld [vmem:[%s5824_s1 + $0xbe4] ss:$8 sps:$4 sm:$0xff]   ;;  %v4362_v40 = vld [vmem:[%s5824_s1 + $0x5e0] ss:$8 sps:$4 sm:$0xff]  }
 0x141   :  { %3034 = vmatprep.subr.bf16.mxu0 %v4283_v43  ;;  %v4365_v43 = vld [vmem:[%s5824_s1 + $0xbe0] ss:$8 sps:$4 sm:$0xff]  }
 0x142   :  { %2780 = vmatmul.mubr.bf16.vlgmr.msra.gmra.mrb[0].mxu1 %v5525_v60 }
 0x143   :  { %3026 = vmatmul.mubr.bf16.vlgmr.msra.gmra.mrb[0].mxu0 %v5529_v61  ;;  %2789 = vmatpush1.bf16.msra.mxu1 %v4277_v62  ;;  %v4370_v62 = vld [vmem:[%s5824_s1 + $0x5f4] ss:$8 sps:$4 sm:$0xff]  }
 0x144   :  { %3035 = vmatpush1.bf16.msra.mxu0 %v4281_v63  ;;  %2790 = vmatprep.subr.bf16.mxu1 %v4286_v22  ;;  %v4373_v63 = vld [vmem:[%s5824_s1 + $0xbf4] ss:$8 sps:$4 sm:$0xff]   ;;  %v4368_v22 = vld [vmem:[%s5824_s1 + $0x5f0] ss:$8 sps:$4 sm:$0xff]  }
 0x145   :  { %3036 = vmatprep.subr.bf16.mxu0 %v4289_v35  ;;  %2820 = vmatprep.mubr.bf16.mxu1 %v530_v0  ;;  %v4371_v35 = vld [vmem:[%s5824_s1 + $0xbf0] ss:$8 sps:$4 sm:$0xff]   ;;  %v4376_v0 = vld [vmem:[%s5824_s1 + $0xc04] ss:$8 sps:$4 sm:$0xff]  }
 0x146   :  { %3066 = vmatprep.mubr.bf16.mxu0 %v580_v1  ;;  %v4386_v1 = vld [vmem:[%s5826_s3 + $0x40] sm:$0xff]  }
 0x147   :  { %2791 = vmatpush1.bf16.msra.mxu1 %v4284_v2  ;;  %v528_v2 = vcombine.high %v5525_v60, %v5525_v60  ;;  %v4388_v60 = vld [vmem:[%s5826_s3 + $0x48] sm:$0xff]  }
 0x148   :  { %3037 = vmatpush1.bf16.msra.mxu0 %v4287_v3  ;;  %2792 = vmatprep.subr.bf16.mxu1 %v4292_v58  ;;  %v578_v3 = vcombine.high %v5529_v61, %v5529_v61  ;;  %v4374_v58 = vld [vmem:[%s5824_s1 + $0xc00] ss:$8 sps:$4 sm:$0xff]   ;;  %v4377_v61 = vld [vmem:[%s5824_s1 + $0xc10] ss:$8 sps:$4 sm:$0xff]  }
 0x149   :  { %3038 = vmatprep.subr.bf16.mxu0 %v4295_v59  ;;  %v4379_v59 = vld [vmem:[%s5824_s1 + $0xc14] ss:$8 sps:$4 sm:$0xff]  }
 0x14b   :  { %2793 = vmatpush1.bf16.msra.mxu1 %v4290_v4  ;;  %v4387_v4 = vld [vmem:[%s5826_s3] sm:$0xff]  }
 0x14c   :  { %3039 = vmatpush1.bf16.msra.mxu0 %v4293_v5  ;;  %2794 = vmatprep.subr.bf16.mxu1 %v4298_v6  ;;  %v4429_v5 = vmov 0   ;;  %v4382_v6 = vld [vmem:[%s5824_s1 + $0xc24] ss:$8 sps:$4 sm:$0xff]  }
 0x14d   :  { %3040 = vmatprep.subr.bf16.mxu0 %v4301_v7  ;;  %v4389_v7 = vld [vmem:[%s5826_s3 + $0x8] sm:$0xff]  }
 0x14f   :  { %2795 = vmatpush1.bf16.msra.mxu1 %v4296_v8  ;;  %v4380_v8 = vld [vmem:[%s5824_s1 + $0xc20] ss:$8 sps:$4 sm:$0xff]  }
 0x150   :  { %3041 = vmatpush1.bf16.msra.mxu0 %v4299_v9  ;;  %2796 = vmatprep.subr.bf16.mxu1 %v4304_v10  ;;  %v4385_v9 = vld [vmem:[%s5824_s1 + $0xc34] ss:$8 sps:$4 sm:$0xff]   ;;  %v4383_v10 = vld [vmem:[%s5824_s1 + $0xc30] ss:$8 sps:$4 sm:$0xff]  }
 0x151   :  { %3042 = vmatprep.subr.bf16.mxu0 %v4307_v11  ;;  %v3311_v11 = vld.sshfl [vmem:[%s5823_s0 + $0x18] sm:$0x1 pattern:$0x75316420] }
 0x153   :  { %2797 = vmatpush1.bf16.msra.mxu1 %v4302_v12  ;;  %v594_v12 = vrot.slane %v3311_v11, %v4596_v49  ;;  %v4393_v49 = vld [vmem:[%s5826_s3 + $0x18] sm:$0xff]  }
 0x154   :  { %3043 = vmatpush1.bf16.msra.mxu0 %v4305_v13  ;;  %2798 = vmatprep.subr.bf16.mxu1 %v4310_v14  ;;  %v4390_v13 = vld [vmem:[%s5826_s3 + $0x50] sm:$0xff]  }
 0x155   :  { %3044 = vmatprep.subr.bf16.mxu0 %v4313_v15  ;;  %v4391_v14 = vld [vmem:[%s5826_s3 + $0x10] sm:$0xff]   ;;  %v4392_v15 = vld [vmem:[%s5826_s3 + $0x58] sm:$0xff]  }
 0x157   :  { %2799 = vmatpush1.bf16.msra.mxu1 %v4308_v16  ;;  %v4394_v16 = vld [vmem:[%s5826_s3 + $0x60] sm:$0xff]  }
 0x158   :  { %3045 = vmatpush1.bf16.msra.mxu0 %v4311_v19  ;;  %2800 = vmatprep.subr.bf16.mxu1 %v4316_v20  ;;  %v4395_v19 = vld [vmem:[%s5826_s3 + $0x20] sm:$0xff]   ;;  %v4396_v20 = vld [vmem:[%s5826_s3 + $0x68] sm:$0xff]  }
 0x159   :  { %3046 = vmatprep.subr.bf16.mxu0 %v4319_v21  ;;  %v4397_v21 = vld [vmem:[%s5826_s3 + $0x28] sm:$0xff]  }
 0x15b   :  { %2801 = vmatpush1.bf16.msra.mxu1 %v4314_v52  ;;  %v4398_v52 = vld [vmem:[%s5826_s3 + $0x70] sm:$0xff]  }
 0x15c   :  { %3047 = vmatpush1.bf16.msra.mxu0 %v4317_v23  ;;  %2802 = vmatprep.subr.bf16.mxu1 %v4322_v24  ;;  %v4399_v23 = vld [vmem:[%s5826_s3 + $0x30] sm:$0xff]   ;;  %v4400_v24 = vld [vmem:[%s5826_s3 + $0x78] sm:$0xff]  }
 0x15d   :  { %3048 = vmatprep.subr.bf16.mxu0 %v4325_v25  ;;  %v4401_v25 = vld [vmem:[%s5826_s3 + $0x38] sm:$0xff]  }
 0x15f   :  { %2803 = vmatpush1.bf16.msra.mxu1 %v4320_v26 }
 0x160   :  { %3049 = vmatpush1.bf16.msra.mxu0 %v4323_v27  ;;  %2804 = vmatprep.subr.bf16.mxu1 %v4328_v28 }
 0x161   :  { %3050 = vmatprep.subr.bf16.mxu0 %v4331_v29 }
 0x163   :  { %2805 = vmatpush1.bf16.msra.mxu1 %v4326_v30  ;;  %v422_v30 = vsub.s32 0, %v4578_v42 }
 0x164   :  { %3051 = vmatpush1.bf16.msra.mxu0 %v4329_v31  ;;  %2806 = vmatprep.subr.bf16.mxu1 %v4334_v32  ;;  %v418_v31 = vld [vmem:[%s5825_s2] sm:$0x3]  ;;  %v426_v32 = vsub.s32 1, %v4578_v42 }
 0x165   :  { %3052 = vmatprep.subr.bf16.mxu0 %v4337_v17  ;;  %v423_v17 = vrot.slane %v418_v31, %v422_v30  ;;  %v3705_v42 = vld [vmem:[%s5827_s4] ss:$0 sm:$0xff] }
 0x167   :  { %2807 = vmatpush1.bf16.msra.mxu1 %v4332_v34  ;;  %v427_v34 = vrot.slane %v418_v31, %v426_v32 }
 0x168   :  { %3053 = vmatpush1.bf16.msra.mxu0 %v4335_v36  ;;  %2808 = vmatprep.subr.bf16.mxu1 %v4340_v37 }
 0x169   :  { %3054 = vmatprep.subr.bf16.mxu0 %v4343_v38 }
 0x16b   :  { %2809 = vmatpush1.bf16.msra.mxu1 %v4338_v39 }
 0x16c   :  { %3055 = vmatpush1.bf16.msra.mxu0 %v4341_v44  ;;  %2810 = vmatprep.subr.bf16.mxu1 %v4346_v45 }
 0x16d   :  { %3056 = vmatprep.subr.bf16.mxu0 %v4349_v33 }
 0x16f   :  { %2811 = vmatpush1.bf16.msra.mxu1 %v4344_v46 }
 0x170   :  { %3057 = vmatpush1.bf16.msra.mxu0 %v4347_v47  ;;  %2812 = vmatprep.subr.bf16.mxu1 %v4352_v48 }
 0x171   :  { %3058 = vmatprep.subr.bf16.mxu0 %v4355_v18 }
 0x173   :  { %2813 = vmatpush1.bf16.msra.mxu1 %v4350_v41 }
 0x174   :  { %3059 = vmatpush1.bf16.msra.mxu0 %v4353_v50  ;;  %2814 = vmatprep.subr.bf16.mxu1 %v4358_v51 }
 0x175   :  { %3060 = vmatprep.subr.bf16.mxu0 %v4361_v53 }
 0x177   :  { %2815 = vmatpush1.bf16.msra.mxu1 %v4356_v54 }
 0x178   :  { %3061 = vmatpush1.bf16.msra.mxu0 %v4359_v55  ;;  %2816 = vmatprep.subr.bf16.mxu1 %v4364_v56 }
 0x179   :  { %3062 = vmatprep.subr.bf16.mxu0 %v4367_v57 }
 0x17b   :  { %2817 = vmatpush1.bf16.msra.mxu1 %v4362_v40 }
 0x17c   :  { %3063 = vmatpush1.bf16.msra.mxu0 %v4365_v43  ;;  %2818 = vmatprep.subr.bf16.mxu1 %v4370_v62 }
 0x17d   :  { %3064 = vmatprep.subr.bf16.mxu0 %v4373_v63 }
 0x17f   :  { %2819 = vmatpush1.bf16.msra.mxu1 %v4368_v22 }
 0x180   :  { %3065 = vmatpush1.bf16.msra.mxu0 %v4371_v35  ;;  %3722 = vmatprep.subr.bf16.mxu1 %v4386_v1 }
 0x181   :  { %3075 = vmatprep.subr.bf16.mxu0 %v4376_v0 }
 0x182   :  { %2821 = vmatmul.mubr.bf16.vlgmr.msra.gmra.mrb[0].mxu1 %v528_v2 }
 0x183   :  { %3067 = vmatmul.mubr.bf16.vlgmr.msra.gmra.mrb[0].mxu0 %v578_v3  ;;  %3723 = vmatpush3.bf16.msra.mxu1 %v4387_v4 }
 0x184   :  { %3076 = vmatpush1.bf16.msra.mxu0 %v4374_v58  ;;  %3107 = vmatprep.mubr.bf16.mxu0 %v4429_v5 }
 0x185   :  { %3077 = vmatprep.subr.bf16.mxu0 %v4379_v59  ;;  %3724 = vmatprep.subr.bf16.mxu1 %v4388_v60 }
 0x187   :  { %3725 = vmatpush3.bf16.msra.mxu1 %v4389_v7 }
 0x188   :  { %3078 = vmatpush1.bf16.msra.mxu0 %v4377_v61  ;;  %3726 = vmatprep.subr.bf16.mxu1 %v4390_v13 }
 0x189   :  { %3079 = vmatprep.subr.bf16.mxu0 %v4382_v6 }
 0x18b   :  { %3727 = vmatpush3.bf16.msra.mxu1 %v4391_v14 }
 0x18c   :  { %3080 = vmatpush1.bf16.msra.mxu0 %v4380_v8  ;;  %3728 = vmatprep.subr.bf16.mxu1 %v4392_v15 }
 0x18d   :  { %3081 = vmatprep.subr.bf16.mxu0 %v4385_v9 }
 0x18f   :  { %3729 = vmatpush3.bf16.msra.mxu1 %v4393_v49 }
 0x190   :  { %3082 = vmatpush1.bf16.msra.mxu0 %v4383_v10  ;;  %3730 = vmatprep.subr.bf16.mxu1 %v4394_v16 }
 0x193   :  { %3704 = vmatmul.mubr.msk.bf16.vlgmr.msra.gmra.mrb[0].mxu0 %vm2579_vm0, %v594_v12  ;;  %3731 = vmatpush3.bf16.msra.mxu1 %v4395_v19 }
 0x194   :  { %3732 = vmatprep.subr.bf16.mxu1 %v4396_v20 }
 0x197   :  { %3733 = vmatpush3.bf16.msra.mxu1 %v4397_v21 }
 0x198   :  { %3734 = vmatprep.subr.bf16.mxu1 %v4398_v52 }
 0x19b   :  { %3735 = vmatpush3.bf16.msra.mxu1 %v4399_v23 }
 0x19c   :  { %3736 = vmatprep.subr.bf16.mxu1 %v4400_v24 }
 0x19f   :  { %3737 = vmatpush3.bf16.msra.mxu1 %v4401_v25 }
 0x255   :  { %v2822_v26 = vpop.f32.mrb[0].mxu1 }
 0x256   :  { %v2824_v27 = vpop.f32.mrb[1].mxu1  ;;  %v3744_v36 = vadd.f32 %v2822_v26, %v423_v17 }
 0x257   :  { %v2826_v28 = vpop.f32.mrb[2].mxu1  ;;  %v3746_v37 = vadd.f32 %v2824_v27, %v427_v34 }
 0x258   :  { %v2827_v29 = vpop.f32.mrb[3].mxu1 }
 0x266   :  { %v3109_v38 = vpop.f32.mrb[0].mxu0 }
 0x267   :  { %v3745_v39 = vadd.f32 %v3744_v36, %v3109_v38  ;;  %v3111_v44 = vpop.f32.mrb[1].mxu0 }
 0x268   :  { %v3747_v45 = vadd.f32 %v3746_v37, %v3111_v44  ;;  %v3113_v33 = vpop.f32.mrb[2].mxu0 }
 0x269   :  { %v3116_v46 = vmax.f32 %v3745_v39, 0.0  ;;  %v3114_v47 = vpop.f32.mrb[3].mxu0 }
 0x26a   :  { %v3117_v48 = vmax.f32 %v3747_v45, 0.0 }
 0x26b   :  { %v3118_v41 = vpack.c.bf16 %v3116_v46, %v3116_v46 }
 0x26c   :  { %v3119_v18 = vpack.c.bf16 %v3117_v48, %v3117_v48 }
 0x26e   :  { %3287 = vmatprep.mubr.bf16.mxu1 %v3119_v18 }
 0x26f   :  { %3288 = vmatmul.mubr.bf16.vlgmr.msra.gmra.mrb[4].mxu1 %v3118_v41 }
 0x342   :  { %v3738_v50 = vpop.f32.mrb[4].mxu1 }
 0x343   :  { %v3739_v51 = vpop.f32.mrb[5].mxu1 }
 0x344   :  { %v3740_v53 = vadd.f32 %v3739_v51, %v3738_v50  ;;  %v3741_v54 = vpop.f32.mrb[6].mxu1 }
 0x345   :  { %v3742_v55 = vpop.f32.mrb[7].mxu1 }
 0x346   :  { %v3290_v56 = vadd.f32 %v3740_v53, %v3705_v42 }
 0x348   :  { %3296 = vst.msk [vmem:[#allocation2] sm:$0x3] %vm3295_vm1, %v3290_v56 }
 0x349   :  { %4415 = shalt.err (!%p4412_p4)
}
 0x34a   :  { %s4416_s4 = scalar_lea.hbm %s5828_s5, 32 }
 0x34b   :  { %p4417_p5 = scmp.ne.s32.totalorder %s5828_s5, %s4416_s4  ;;  %p4420_p6 = scmp.lt.u32.totalorder %s4416_s4, %s5828_s5 }
 0x34d   :  { %p4422_p7 = pnand %p4420_p6, %p4417_p5 }
 0x34f   :  { %4425 = shalt.err (!%p4422_p7)
}
 0x350   :  { %3306 = dma.vmem_to_hbm [thread:$0]  %s3304_s20, 32, %s5828_s5, [#allocation3]  }
 0x351   :  { %4426 = dma.done.wait [#allocation3], 32  }
 0x352   :  { %4427 = vsyncadd [#allocation3], 4294967264 }
 0x353   :  { %3310 = vsyncpa [#allocation3], 1 }

</bundles_post_ra>
